<compile_context>
chip_gen: v5e
topology: v5e:2x2
jax: 0.10.0
libtpu: 0.0.40
codegen_flags: <defaults>
</compile_context>

<pallas_src>
import jax
import jax.numpy as jnp
from jax.experimental import pallas as pl
from jax.experimental.pallas import tpu as pltpu


_NP = 128  # lane-dense padded logit width (real logits are [:, :3])


def _vmem_capacity_bytes():
    """Physical per-core VMEM; conservative 64 MiB (v7x) if the query fails."""
    try:
        cap = getattr(pltpu.get_tpu_info(), "vmem_capacity_bytes", None)
        if cap:
            return int(cap)
    except Exception:
        pass
    return 64 << 20


def _pick_tile(dim, target, quantum):
    """Largest tile <= target that divides dim and is a multiple of quantum,
    falling back to the full dimension (always a legal block size)."""
    if dim <= target:
        return dim
    t = (target // quantum) * quantum
    while t >= quantum:
        if dim % t == 0:
            return t
        t -= quantum
    return dim


def pack_sbert_head_params(w, b, *, compute_dtype=jnp.bfloat16):
    """Pack nn.Linear(3D, 3) params once: W^T split into three [D, 128]
    lane-dense slabs (for out1 / out2 / |out1-out2|) plus a [1, 128] f32 bias.
    Hoisted out of the per-call path so packed params can be reused."""
    assert w.ndim == 2 and w.shape[0] == 3 and w.shape[1] % 3 == 0, w.shape
    assert b.shape == (3,), b.shape
    D = w.shape[1] // 3
    w_t = jnp.transpose(w.astype(jnp.float32))                         # [3D, 3]
    w_pad = jnp.zeros((3 * D, _NP), jnp.float32).at[:, :3].set(w_t)
    w_pad = w_pad.astype(compute_dtype)
    b_pad = jnp.zeros((1, _NP), jnp.float32).at[0, :3].set(b.astype(jnp.float32))
    return w_pad[:D], w_pad[D:2 * D], w_pad[2 * D:], b_pad


def _make_sbert_head_kernel(pool_on_mxu, compute_dtype):
    def kernel(t1_ref, m1_ref, t2_ref, m2_ref, inv1_ref, inv2_ref,
               w1_ref, w2_ref, w3_ref, b_ref, o_ref, acc1, acc2):
        li = pl.program_id(1)

        # New batch block: zero the f32 accumulators.
        @pl.when(li == 0)
        def _():
            acc1[...] = jnp.zeros_like(acc1)
            acc2[...] = jnp.zeros_like(acc2)

        if pool_on_mxu:
            # Batched MXU contraction (bf16 operands, f32 accumulate):
            #   [TB,1,TL] x [TB,TL,D] -> [TB,1,D]
            # No [TB,TL]->[TB,TL,D] mask relayout, no per-element f32 cast.
            m1 = m1_ref[...].astype(compute_dtype)[:, None, :]
            m2 = m2_ref[...].astype(compute_dtype)[:, None, :]
            s1 = jnp.einsum('bql,bld->bqd', m1, t1_ref[...],
                            preferred_element_type=jnp.float32)
            s2 = jnp.einsum('bql,bld->bqd', m2, t2_ref[...],
                            preferred_element_type=jnp.float32)
            acc1[...] += s1[:, 0, :]
            acc2[...] += s2[:, 0, :]
        else:
            # Exact-f32 fallback: VPU multiply + sublane reduce.
            m1 = m1_ref[...].astype(jnp.float32)
            m2 = m2_ref[...].astype(jnp.float32)
            acc1[...] += jnp.sum(t1_ref[...].astype(jnp.float32) * m1[:, :, None], axis=1)
            acc2[...] += jnp.sum(t2_ref[...].astype(jnp.float32) * m2[:, :, None], axis=1)

        # Last sequence tile for this batch block: normalize, tanh, fused linear.
        @pl.when(li == pl.num_programs(1) - 1)
        def _():
            out1 = acc1[...] * inv1_ref[...]          # [TB, D] f32
            out2 = acc2[...] * inv2_ref[...]
            diff = jnp.abs(out1 - out2)
            a1 = jnp.tanh(out1).astype(compute_dtype)
            a2 = jnp.tanh(out2).astype(compute_dtype)
            a3 = jnp.tanh(diff).astype(compute_dtype)
            # tanh(concat([out1, out2, diff])) @ W^T + b  ==  sum of three dots
            o_ref[...] = (
                jnp.dot(a1, w1_ref[...], preferred_element_type=jnp.float32)
                + jnp.dot(a2, w2_ref[...], preferred_element_type=jnp.float32)
                + jnp.dot(a3, w3_ref[...], preferred_element_type=jnp.float32)
                + b_ref[...]
            )
    return kernel


def sbert_head(tensor1, mask1, tensor2, mask2, w=None, b=None, *,
               packed_params=None, block_b=None, block_l=None,
               vmem_limit_bytes=None):
    """SentenceBERT classification head.

    tensor*: [B, L, D] encoder hidden states.  Pass bfloat16 for the primary
             (HBM-roofline) path; float32 inputs are a slower, exact fallback.
    mask*:   [B, L] attention masks (any numeric dtype).
    w, b:    nn.Linear(3*D, 3) parameters, or pass packed_params from
             pack_sbert_head_params() to skip per-call packing.
    Returns [B, 3] float32 logits.
    """
    B, L, D = tensor1.shape
    assert tensor2.shape == (B, L, D)
    assert mask1.shape == (B, L) and mask2.shape == (B, L)

    pool_on_mxu = tensor1.dtype == jnp.bfloat16
    compute_dtype = jnp.bfloat16 if pool_on_mxu else jnp.float32

    if packed_params is None:
        assert w is not None and b is not None, "pass (w, b) or packed_params"
        w1, w2, w3, b_pad = pack_sbert_head_params(w, b, compute_dtype=compute_dtype)
    else:
        w1, w2, w3, b_pad = packed_params
        w1 = w1.astype(compute_dtype)
        w2 = w2.astype(compute_dtype)
        w3 = w3.astype(compute_dtype)
        b_pad = b_pad.astype(jnp.float32)
    assert w1.shape == (D, _NP) and w2.shape == (D, _NP) and w3.shape == (D, _NP)
    assert b_pad.shape == (1, _NP)

    # Masks stay f32 in HBM (~1/D of the bytes); counts and their reciprocals
    # are precomputed here so the kernel finalize is just a broadcast multiply.
    # (Clamp keeps fully-padded rows finite where the reference would NaN.)
    m1 = mask1.astype(jnp.float32)
    m2 = mask2.astype(jnp.float32)
    inv1 = 1.0 / jnp.maximum(jnp.sum(m1, axis=1, keepdims=True), 1e-9)   # [B,1]
    inv2 = 1.0 / jnp.maximum(jnp.sum(m2, axis=1, keepdims=True), 1e-9)

    # ---- chip-aware tiling --------------------------------------------------
    vmem_cap = _vmem_capacity_bytes()
    itemsize = jnp.dtype(tensor1.dtype).itemsize

    if block_l is None:
        # 256-long sequence tiles on 128 MiB parts (v5e/v6e); 128 on v7x (64 MiB).
        block_l = 256 if vmem_cap >= (96 << 20) else 128
    TL = _pick_tile(L, block_l, 128)

    if block_b is None:
        # Budget ~45% of physical VMEM for the double-buffered tensor streams.
        per_row = 2 * 2 * TL * D * itemsize            # 2 tensors x 2 buffers
        tb_budget = max(8, ((int(0.45 * vmem_cap) // max(per_row, 1)) // 8) * 8)
        # Keep >=4 (or >=2) batch blocks so the "parallel" grid axis can shard
        # across TensorCores (2 TCs/chip on v7x).
        if B >= 32:
            tb_cores = max(8, ((B // 4) // 8) * 8)
        elif B >= 16:
            tb_cores = max(8, ((B // 2) // 8) * 8)
        else:
            tb_cores = B
        block_b = max(8, min(tb_budget, tb_cores, 64))
    TB = _pick_tile(B, block_b, 8)

    if vmem_limit_bytes is None:
        w_isz = jnp.dtype(compute_dtype).itemsize
        est = (2 * 2 * TB * TL * D * itemsize          # tensors, double-buffered
               + 2 * 2 * TB * TL * 4                   # masks, double-buffered
               + 4 * 2 * TB * 4                        # inverse counts
               + 2 * (3 * D * _NP * w_isz + _NP * 4)   # weight slabs + bias
               + 2 * TB * _NP * 4                      # output block
               + 2 * TB * D * 4)                       # f32 accumulators
        vmem_limit_bytes = int(min(int(0.75 * vmem_cap),
                                   max(32 << 20, int(1.5 * est))))

    grid = (B // TB, L // TL)
    kernel = _make_sbert_head_kernel(pool_on_mxu, compute_dtype)

    out_padded = pl.pallas_call(
        kernel,
        out_shape=jax.ShapeDtypeStruct((B, _NP), jnp.float32),
        grid_spec=pltpu.PrefetchScalarGridSpec(
            num_scalar_prefetch=0,
            grid=grid,
            in_specs=[
                pl.BlockSpec((TB, TL, D), lambda bi, li: (bi, li, 0)),  # tensor1
                pl.BlockSpec((TB, TL),    lambda bi, li: (bi, li)),     # mask1
                pl.BlockSpec((TB, TL, D), lambda bi, li: (bi, li, 0)),  # tensor2
                pl.BlockSpec((TB, TL),    lambda bi, li: (bi, li)),     # mask2
                pl.BlockSpec((TB, 1),     lambda bi, li: (bi, 0)),      # 1/count1
                pl.BlockSpec((TB, 1),     lambda bi, li: (bi, 0)),      # 1/count2
                pl.BlockSpec((D, _NP),    lambda bi, li: (0, 0)),       # W slab 1
                pl.BlockSpec((D, _NP),    lambda bi, li: (0, 0)),       # W slab 2
                pl.BlockSpec((D, _NP),    lambda bi, li: (0, 0)),       # W slab 3
                pl.BlockSpec((1, _NP),    lambda bi, li: (0, 0)),       # bias
            ],
            out_specs=pl.BlockSpec((TB, _NP), lambda bi, li: (bi, 0)),
            scratch_shapes=[
                pltpu.VMEM((TB, D), jnp.float32),   # acc1 (masked sum)
                pltpu.VMEM((TB, D), jnp.float32),   # acc2
            ],
        ),
        compiler_params=pltpu.CompilerParams(
            dimension_semantics=("parallel", "arbitrary"),
            vmem_limit_bytes=vmem_limit_bytes,
        ),
    )(tensor1, m1, tensor2, m2, inv1, inv2, w1, w2, w3, b_pad)

    return out_padded[:, :3]


def sbert_head_ref(tensor1, mask1, tensor2, mask2, w, b):
    t1 = tensor1.astype(jnp.float32)
    t2 = tensor2.astype(jnp.float32)
    m1 = mask1.astype(jnp.float32)
    m2 = mask2.astype(jnp.float32)
    out1 = (t1 * m1[:, :, None]).sum(1) / m1.sum(1)[:, None]
    out2 = (t2 * m2[:, :, None]).sum(1) / m2.sum(1)[:, None]
    diff = jnp.abs(out1 - out2)
    feat = jnp.concatenate((out1, out2, diff), axis=1)
    return jnp.tanh(feat) @ w.T + b


if __name__ == "__main__":
    # TODO(synk): tokenizer + pretrained BERT encoder (AutoTokenizer / AutoModel)
    # are not translatable; the kernel consumes synthetic "BERT last_hidden_state"
    # tensors directly.  Small stand-ins for (batch, max_length, 768); L a
    # multiple of 128 and B a multiple of 8 so the explicit small tiles give a
    # (2, 2) grid exercising accumulate + finalize on both axes.
    B, L, D = 16, 256, 64

    key = jax.random.PRNGKey(0)
    k1, k2, k3, k4 = jax.random.split(key, 4)

    tensor1 = jax.random.normal(k1, (B, L, D), dtype=jnp.float32)
    tensor2 = jax.random.normal(k2, (B, L, D), dtype=jnp.float32)

    # deterministic attention masks (varied valid lengths, all >= 1)
    pos = jnp.arange(L)[None, :]
    len1 = (jnp.arange(B) * 37) % L + 1
    len2 = (jnp.arange(B) * 53) % L + 1
    mask1 = (pos < len1[:, None]).astype(jnp.float32)
    mask2 = (pos < len2[:, None]).astype(jnp.float32)

    # nn.Linear(3*D, 3) parameters, deterministic init
    w = 0.02 * jax.random.normal(k3, (3, 3 * D), dtype=jnp.float32)
    b = 0.01 * jax.random.normal(k4, (3,), dtype=jnp.float32)

    ref = sbert_head_ref(tensor1, mask1, tensor2, mask2, w, b)

    # Primary path: bf16 streaming (MXU pooling, bf16 epilogue), weight packing
    # hoisted out of the per-call path.
    t1_bf16 = tensor1.astype(jnp.bfloat16)
    t2_bf16 = tensor2.astype(jnp.bfloat16)
    packed_bf16 = pack_sbert_head_params(w, b, compute_dtype=jnp.bfloat16)

    out_bf16 = jax.block_until_ready(
        sbert_head(t1_bf16, mask1, t2_bf16, mask2,
                   packed_params=packed_bf16, block_b=8, block_l=128))
    assert out_bf16.shape == (B, 3)
    assert jnp.allclose(out_bf16, ref, atol=1e-2, rtol=1e-2), (out_bf16, ref)

    # Same primary path with chip-aware auto tiling.
    out_auto = jax.block_until_ready(
        sbert_head(t1_bf16, mask1, t2_bf16, mask2, packed_params=packed_bf16))
    assert out_auto.shape == (B, 3)
    assert jnp.allclose(out_auto, ref, atol=1e-2, rtol=1e-2), (out_auto, ref)

    # f32 fallback path (exact VPU pooling, f32 epilogue).
    out_f32 = jax.block_until_ready(
        sbert_head(tensor1, mask1, tensor2, mask2, w, b, block_b=8, block_l=128))
    assert out_f32.shape == (B, 3)
    assert jnp.allclose(out_f32, ref, atol=1e-4, rtol=1e-4), (out_f32, ref)

    print("KERNEL_OK")
</pallas_src>

<mosaic_0001>
module attributes {stable_mosaic.version = 11 : i64} {
  func.func @kernel(%arg0: i32, %arg1: i32, %arg2: memref<8x128x64xbf16, #tpu.memory_space<vmem>>, %arg3: memref<8x128xf32, #tpu.memory_space<vmem>>, %arg4: memref<8x128x64xbf16, #tpu.memory_space<vmem>>, %arg5: memref<8x128xf32, #tpu.memory_space<vmem>>, %arg6: memref<8x1xf32, #tpu.memory_space<vmem>>, %arg7: memref<8x1xf32, #tpu.memory_space<vmem>>, %arg8: memref<64x128xbf16, #tpu.memory_space<vmem>>, %arg9: memref<64x128xbf16, #tpu.memory_space<vmem>>, %arg10: memref<64x128xbf16, #tpu.memory_space<vmem>>, %arg11: memref<1x128xf32, #tpu.memory_space<vmem>>, %arg12: memref<8x128xf32, #tpu.memory_space<vmem>>, %arg13: memref<8x64xf32, #tpu.memory_space<vmem>>, %arg14: memref<8x64xf32, #tpu.memory_space<vmem>>) attributes {dimension_semantics = [#tpu.dimension_semantics<parallel>, #tpu.dimension_semantics<arbitrary>], iteration_bounds = array<i64: 2, 2>, scalar_prefetch = 0 : i64, scratch_operands = 2 : i64, tpu.core_type = #tpu.core_type<tc>, window_params = [{transform_indices = @transform_0, window_bounds = array<i64: 8, 128, 64>}, {transform_indices = @transform_1, window_bounds = array<i64: 8, 128>}, {transform_indices = @transform_2, window_bounds = array<i64: 8, 128, 64>}, {transform_indices = @transform_3, window_bounds = array<i64: 8, 128>}, {transform_indices = @transform_4, window_bounds = array<i64: 8, 1>}, {transform_indices = @transform_5, window_bounds = array<i64: 8, 1>}, {pipeline_mode = #tpu.pipeline_mode<synchronous>, transform_indices = @transform_6, window_bounds = array<i64: 64, 128>}, {pipeline_mode = #tpu.pipeline_mode<synchronous>, transform_indices = @transform_7, window_bounds = array<i64: 64, 128>}, {pipeline_mode = #tpu.pipeline_mode<synchronous>, transform_indices = @transform_8, window_bounds = array<i64: 64, 128>}, {pipeline_mode = #tpu.pipeline_mode<synchronous>, transform_indices = @transform_9, window_bounds = array<i64: 1, 128>}, {transform_indices = @transform_10, window_bounds = array<i64: 8, 128>}]} {
    %c0_i32 = arith.constant 0 : i32
    %0 = arith.cmpi eq, %arg1, %c0_i32 : i32
    %1 = arith.extui %0 : i1 to i32
    %c0_i32_0 = arith.constant 0 : i32
    %2 = arith.cmpi ne, %1, %c0_i32_0 : i32
    scf.if %2 {
      %cst_20 = arith.constant 0.000000e+00 : f32
      %24 = vector.broadcast %cst_20 : f32 to vector<8x64xf32>
      %c0_21 = arith.constant 0 : index
      %c0_22 = arith.constant 0 : index
      %25 = vector.load %arg13[%c0_21, %c0_22] : memref<8x64xf32, #tpu.memory_space<vmem>>, vector<8x64xf32>
      tpu.vector_store %arg13[%c0_21, %c0_22], %24 {strides = array<i32>} : memref<8x64xf32, #tpu.memory_space<vmem>>, vector<8x64xf32>,
      %cst_23 = arith.constant 0.000000e+00 : f32
      %26 = vector.broadcast %cst_23 : f32 to vector<8x64xf32>
      %c0_24 = arith.constant 0 : index
      %c0_25 = arith.constant 0 : index
      %27 = vector.load %arg14[%c0_24, %c0_25] : memref<8x64xf32, #tpu.memory_space<vmem>>, vector<8x64xf32>
      tpu.vector_store %arg14[%c0_24, %c0_25], %26 {strides = array<i32>} : memref<8x64xf32, #tpu.memory_space<vmem>>, vector<8x64xf32>,
    } else {
    }
    %c0 = arith.constant 0 : index
    %c0_1 = arith.constant 0 : index
    %3 = vector.load %arg3[%c0, %c0_1] : memref<8x128xf32, #tpu.memory_space<vmem>>, vector<8x128xf32>
    %4 = arith.truncf %3 : vector<8x128xf32> to vector<8x128xbf16>
    %5 = vector.shape_cast %4 : vector<8x128xbf16> to vector<8x1x128xbf16>
    %c0_2 = arith.constant 0 : index
    %c0_3 = arith.constant 0 : index
    %6 = vector.load %arg5[%c0_2, %c0_3] : memref<8x128xf32, #tpu.memory_space<vmem>>, vector<8x128xf32>
    %7 = arith.truncf %6 : vector<8x128xf32> to vector<8x128xbf16>
    %8 = vector.shape_cast %7 : vector<8x128xbf16> to vector<8x1x128xbf16>
    %c0_4 = arith.constant 0 : index
    %c0_5 = arith.constant 0 : index
    %c0_6 = arith.constant 0 : index
    %9 = vector.load %arg2[%c0_4, %c0_5, %c0_6] : memref<8x128x64xbf16, #tpu.memory_space<vmem>>, vector<8x128x64xbf16>
    "tpu.trace_start"() <{level = 10 : i32, message = "bql,bld->bqd"}> : () -> ()
    %cst = arith.constant dense<0.000000e+00> : vector<8x1x64xf32>
    %10 = tpu.matmul %5, %9, %cst {dimension_numbers = #tpu.dot_dimension_numbers<[2], [1], [1], [2], [0, 0, 0, 1, 1, 2], [0], [0]>} : vector<8x1x128xbf16>, vector<8x128x64xbf16>, vector<8x1x64xf32> -> vector<8x1x64xf32>
    "tpu.trace_stop"() : () -> ()
    %c0_7 = arith.constant 0 : index
    %c0_8 = arith.constant 0 : index
    %c0_9 = arith.constant 0 : index
    %11 = vector.load %arg4[%c0_7, %c0_8, %c0_9] : memref<8x128x64xbf16, #tpu.memory_space<vmem>>, vector<8x128x64xbf16>
    "tpu.trace_start"() <{level = 10 : i32, message = "bql,bld->bqd"}> : () -> ()
    %cst_10 = arith.constant dense<0.000000e+00> : vector<8x1x64xf32>
    %12 = tpu.matmul %8, %11, %cst_10 {dimension_numbers = #tpu.dot_dimension_numbers<[2], [1], [1], [2], [0, 0, 0, 1, 1, 2], [0], [0]>} : vector<8x1x128xbf16>, vector<8x128x64xbf16>, vector<8x1x64xf32> -> vector<8x1x64xf32>
    "tpu.trace_stop"() : () -> ()
    %c0_11 = arith.constant 0 : index
    %c0_12 = arith.constant 0 : index
    %13 = vector.load %arg13[%c0_11, %c0_12] : memref<8x64xf32, #tpu.memory_space<vmem>>, vector<8x64xf32>
    %14 = vector.shape_cast %10 : vector<8x1x64xf32> to vector<8x64xf32>
    %15 = arith.addf %13, %14 : vector<8x64xf32>
    %c0_13 = arith.constant 0 : index
    %c0_14 = arith.constant 0 : index
    %16 = vector.load %arg13[%c0_13, %c0_14] : memref<8x64xf32, #tpu.memory_space<vmem>>, vector<8x64xf32>
    tpu.vector_store %arg13[%c0_13, %c0_14], %15 {strides = array<i32>} : memref<8x64xf32, #tpu.memory_space<vmem>>, vector<8x64xf32>,
    %c0_15 = arith.constant 0 : index
    %c0_16 = arith.constant 0 : index
    %17 = vector.load %arg14[%c0_15, %c0_16] : memref<8x64xf32, #tpu.memory_space<vmem>>, vector<8x64xf32>
    %18 = vector.shape_cast %12 : vector<8x1x64xf32> to vector<8x64xf32>
    %19 = arith.addf %17, %18 : vector<8x64xf32>
    %c0_17 = arith.constant 0 : index
    %c0_18 = arith.constant 0 : index
    %20 = vector.load %arg14[%c0_17, %c0_18] : memref<8x64xf32, #tpu.memory_space<vmem>>, vector<8x64xf32>
    tpu.vector_store %arg14[%c0_17, %c0_18], %19 {strides = array<i32>} : memref<8x64xf32, #tpu.memory_space<vmem>>, vector<8x64xf32>,
    %c1_i32 = arith.constant 1 : i32
    %21 = arith.cmpi eq, %arg1, %c1_i32 : i32
    %22 = arith.extui %21 : i1 to i32
    %c0_i32_19 = arith.constant 0 : i32
    %23 = arith.cmpi ne, %22, %c0_i32_19 : i32
    scf.if %23 {
      %c0_20 = arith.constant 0 : index
      %c0_21 = arith.constant 0 : index
      %24 = vector.load %arg13[%c0_20, %c0_21] : memref<8x64xf32, #tpu.memory_space<vmem>>, vector<8x64xf32>
      %c0_22 = arith.constant 0 : index
      %c0_23 = arith.constant 0 : index
      %25 = vector.load %arg6[%c0_22, %c0_23] : memref<8x1xf32, #tpu.memory_space<vmem>>, vector<8x1xf32>
      %26 = vector.broadcast %25 : vector<8x1xf32> to vector<8x64xf32>
      %27 = arith.mulf %24, %26 : vector<8x64xf32>
      %c0_24 = arith.constant 0 : index
      %c0_25 = arith.constant 0 : index
      %28 = vector.load %arg14[%c0_24, %c0_25] : memref<8x64xf32, #tpu.memory_space<vmem>>, vector<8x64xf32>
      %c0_26 = arith.constant 0 : index
      %c0_27 = arith.constant 0 : index
      %29 = vector.load %arg7[%c0_26, %c0_27] : memref<8x1xf32, #tpu.memory_space<vmem>>, vector<8x1xf32>
      %30 = vector.broadcast %29 : vector<8x1xf32> to vector<8x64xf32>
      %31 = arith.mulf %28, %30 : vector<8x64xf32>
      %32 = arith.subf %27, %31 : vector<8x64xf32>
      %33 = math.absf %32 : vector<8x64xf32>
      %34 = math.tanh %27 : vector<8x64xf32>
      %35 = arith.truncf %34 : vector<8x64xf32> to vector<8x64xbf16>
      %36 = math.tanh %31 : vector<8x64xf32>
      %37 = arith.truncf %36 : vector<8x64xf32> to vector<8x64xbf16>
      %38 = math.tanh %33 : vector<8x64xf32>
      %39 = arith.truncf %38 : vector<8x64xf32> to vector<8x64xbf16>
      %c0_28 = arith.constant 0 : index
      %c0_29 = arith.constant 0 : index
      %40 = vector.load %arg8[%c0_28, %c0_29] : memref<64x128xbf16, #tpu.memory_space<vmem>>, vector<64x128xbf16>
      %cst_30 = arith.constant dense<0.000000e+00> : vector<8x128xf32>
      %41 = tpu.matmul %35, %40, %cst_30 {dimension_numbers = #tpu.dot_dimension_numbers<[1], [0], [0], [1], [0, 0, 1, 1], [], []>} : vector<8x64xbf16>, vector<64x128xbf16>, vector<8x128xf32> -> vector<8x128xf32>
      %c0_31 = arith.constant 0 : index
      %c0_32 = arith.constant 0 : index
      %42 = vector.load %arg9[%c0_31, %c0_32] : memref<64x128xbf16, #tpu.memory_space<vmem>>, vector<64x128xbf16>
      %cst_33 = arith.constant dense<0.000000e+00> : vector<8x128xf32>
      %43 = tpu.matmul %37, %42, %cst_33 {dimension_numbers = #tpu.dot_dimension_numbers<[1], [0], [0], [1], [0, 0, 1, 1], [], []>} : vector<8x64xbf16>, vector<64x128xbf16>, vector<8x128xf32> -> vector<8x128xf32>
      %44 = arith.addf %41, %43 : vector<8x128xf32>
      %c0_34 = arith.constant 0 : index
      %c0_35 = arith.constant 0 : index
      %45 = vector.load %arg10[%c0_34, %c0_35] : memref<64x128xbf16, #tpu.memory_space<vmem>>, vector<64x128xbf16>
      %cst_36 = arith.constant dense<0.000000e+00> : vector<8x128xf32>
      %46 = tpu.matmul %39, %45, %cst_36 {dimension_numbers = #tpu.dot_dimension_numbers<[1], [0], [0], [1], [0, 0, 1, 1], [], []>} : vector<8x64xbf16>, vector<64x128xbf16>, vector<8x128xf32> -> vector<8x128xf32>
      %47 = arith.addf %44, %46 : vector<8x128xf32>
      %c0_37 = arith.constant 0 : index
      %c0_38 = arith.constant 0 : index
      %48 = vector.load %arg11[%c0_37, %c0_38] : memref<1x128xf32, #tpu.memory_space<vmem>>, vector<1x128xf32>
      %49 = vector.broadcast %48 : vector<1x128xf32> to vector<8x128xf32>
      %50 = arith.addf %47, %49 : vector<8x128xf32>
      %c0_39 = arith.constant 0 : index
      %c0_40 = arith.constant 0 : index
      %51 = vector.load %arg12[%c0_39, %c0_40] : memref<8x128xf32, #tpu.memory_space<vmem>>, vector<8x128xf32>
      tpu.vector_store %arg12[%c0_39, %c0_40], %50 {strides = array<i32>} : memref<8x128xf32, #tpu.memory_space<vmem>>, vector<8x128xf32>,
    } else {
    }
    return
  }
  func.func @transform_0(%arg0: i32, %arg1: i32) -> (i32, i32, i32) {
    %c0_i32 = arith.constant 0 : i32
    %c0_i32_0 = arith.constant 0 : i32
    return %arg0, %arg1, %c0_i32 : i32, i32, i32
  }
  func.func @transform_1(%arg0: i32, %arg1: i32) -> (i32, i32) {
    %c0_i32 = arith.constant 0 : i32
    return %arg0, %arg1 : i32, i32
  }
  func.func @transform_2(%arg0: i32, %arg1: i32) -> (i32, i32, i32) {
    %c0_i32 = arith.constant 0 : i32
    %c0_i32_0 = arith.constant 0 : i32
    return %arg0, %arg1, %c0_i32 : i32, i32, i32
  }
  func.func @transform_3(%arg0: i32, %arg1: i32) -> (i32, i32) {
    %c0_i32 = arith.constant 0 : i32
    return %arg0, %arg1 : i32, i32
  }
  func.func @transform_4(%arg0: i32, %arg1: i32) -> (i32, i32) {
    %c0_i32 = arith.constant 0 : i32
    %c0_i32_0 = arith.constant 0 : i32
    return %arg0, %c0_i32 : i32, i32
  }
  func.func @transform_5(%arg0: i32, %arg1: i32) -> (i32, i32) {
    %c0_i32 = arith.constant 0 : i32
    %c0_i32_0 = arith.constant 0 : i32
    return %arg0, %c0_i32 : i32, i32
  }
  func.func @transform_6(%arg0: i32, %arg1: i32) -> (i32, i32) {
    %c0_i32 = arith.constant 0 : i32
    %c0_i32_0 = arith.constant 0 : i32
    %c0_i32_1 = arith.constant 0 : i32
    return %c0_i32, %c0_i32_0 : i32, i32
  }
  func.func @transform_7(%arg0: i32, %arg1: i32) -> (i32, i32) {
    %c0_i32 = arith.constant 0 : i32
    %c0_i32_0 = arith.constant 0 : i32
    %c0_i32_1 = arith.constant 0 : i32
    return %c0_i32, %c0_i32_0 : i32, i32
  }
  func.func @transform_8(%arg0: i32, %arg1: i32) -> (i32, i32) {
    %c0_i32 = arith.constant 0 : i32
    %c0_i32_0 = arith.constant 0 : i32
    %c0_i32_1 = arith.constant 0 : i32
    return %c0_i32, %c0_i32_0 : i32, i32
  }
  func.func @transform_9(%arg0: i32, %arg1: i32) -> (i32, i32) {
    %c0_i32 = arith.constant 0 : i32
    %c0_i32_0 = arith.constant 0 : i32
    %c0_i32_1 = arith.constant 0 : i32
    return %c0_i32, %c0_i32_0 : i32, i32
  }
  func.func @transform_10(%arg0: i32, %arg1: i32) -> (i32, i32) {
    %c0_i32 = arith.constant 0 : i32
    %c0_i32_0 = arith.constant 0 : i32
    return %arg0, %c0_i32 : i32, i32
  }
}

</mosaic_0001>

<bundles_post_ra>
// kernel: tpu_custom_call.1
= control target key start
LH: loop header
LB: loop body
LE: loop exit
PB: predicated region body
PF: predicated region fallthrough
CT: control target
= control target key end

     0   :  { %s5055_s0 = inlined_call_operand.vmem [shape: bf16[16,256,64], index: 0, kind: input, shape index: {}]   ;;  %s5056_s1 = inlined_call_operand.vmem [shape: f32[16,256], index: 1, kind: input, shape index: {}]   ;;  %s5057_s2 = inlined_call_operand.vmem [shape: bf16[16,256,64], index: 2, kind: input, shape index: {}]   ;;  %s5058_s3 = inlined_call_operand.vmem [shape: f32[16,256], index: 3, kind: input, shape index: {}]   ;;  %s5059_s4 = inlined_call_operand.vmem [shape: f32[16,1], index: 4, kind: input, shape index: {}]   ;;  %s5060_s5 = inlined_call_operand.vmem [shape: f32[16,1], index: 5, kind: input, shape index: {}]   ;;  %s5061_s6 = inlined_call_operand.vmem [shape: bf16[64,128], index: 6, kind: input, shape index: {}]   ;;  %s5062_s7 = inlined_call_operand.vmem [shape: bf16[64,128], index: 7, kind: input, shape index: {}]   ;;  %s5063_s8 = inlined_call_operand.vmem [shape: bf16[64,128], index: 8, kind: input, shape index: {}]   ;;  %s5064_s9 = inlined_call_operand.vmem [shape: f32[1,128], index: 9, kind: input, shape index: {}]   ;;  %s5065_s10 = inlined_call_operand.hbm [shape: f32[16,128], index: 10, kind: output, shape index: {}]  }
   0x1   :  { %5076 = sst [smem:[#allocation19_spill]] %s5055_s0 }
   0x2   :  { %5077 = sst [smem:[#allocation20_spill]] %s5057_s2 }
   0x3   :  { %5078 = sst [smem:[#allocation21_spill]] %s5064_s9 }
   0x4   :  { %5079 = sst [smem:[#allocation22_spill]] %s5065_s10 }
   0x5   :  { %15 = vsyncpa [#allocation7], 0 }
   0x6   :  { %17 = vsyncpa [#allocation7 + $0x1], 0  ;;  %s4367_s13 = smov 0   ;;  %s4369_s14 = smov 0  }
   0x7   :  { %s4371_s15 = smov 0   ;;  %s4373_s16 = smov 0  }
   0x8   :  { %s4375_s17 = smov 0   ;;  %s4377_s18 = smov 0  }
   0x9   :  { %s4379_s19 = smov 0   ;;  %s4381_s20 = smov 0  }
   0xa   :  { %s4383_s21 = smov 0   ;;  %s4385_s22 = smov 0  }
   0xb LB: > { %5080 = sst [smem:[#allocation9_spill]] %s4272_s13  ;;  %s3358_s23 = sadd.s32 4294967295, %s4308_s22   ;;  %s4308_s22 = sphi %s4385_s22, %s23_s22   ;;  %s4304_s21 = sphi %s4383_s21, %s5107_s21   ;;  %s4300_s20 = sphi %s4381_s20, %s5106_s20   ;;  %s4296_s19 = sphi %s4379_s19, %s5105_s19   ;;  %s4292_s18 = sphi %s4377_s18, %s5104_s18   ;;  %s4288_s17 = sphi %s4375_s17, %s5103_s17   ;;  %s4284_s16 = sphi %s4373_s16, %s5102_s16   ;;  %s4280_s15 = sphi %s4371_s15, %s5101_s15   ;;  %s4276_s14 = sphi %s4369_s14, %s5109_s14   ;;  %s4272_s13 = sphi %s4367_s13, %s5108_s13  }
   0xc   : > { %5081 = sst [smem:[#allocation10_spill]] %s4280_s15  ;;  %s3359_s24 = sadd.s32 4294967294, %s4308_s22  }
   0xd   : > { %5082 = sst [smem:[#allocation11_spill]] %s4288_s17  ;;  %s32_s25 = sadd.s32 1, %s4300_s20 }
   0xe   : > { %5083 = sst [smem:[#allocation12_spill]] %s4300_s20  ;;  %s35_s26 = sadd.s32 1, %s4304_s21 }
   0xf   : > { %5084 = sst [smem:[#allocation13_spill]] %s4304_s21  ;;  %p33_p0 = scmp.ge.s32.totalorder %s32_s25, 2 }
  0x10   : > { %s44_s27 = sadd.s32 1, %s4288_s17  ;;  %p51_p1 = scmp.ne.s32.totalorder %s4288_s17, %s4284_s16 }
  0x11   : > { %p52_p2 = scmp.eq.s32.totalorder %s4308_s22, 0  ;;  %s5111_s25 = smov (%p33_p0, %s32_s25), 0 }
  0x12   : > { %5085 = sst [smem:[#allocation14_spill]] %s5111_s25  ;;  %s5113_s26 = smov (!%p33_p0, %s35_s26), %s4304_s21 }
  0x13   : > { %s40_s28 = ssub.s32 %s4300_s20, %s5111_s25  ;;  %p4430_p3 = por %p52_p2, %p51_p1 }
  0x14   : > { %p37_p4 = scmp.ge.s32.totalorder %s5113_s26, 2  ;;  %s290_s30 = sadd.s32 1, %s4280_s15 }
  0x15   : > { %p300_p5 = scmp.ne.s32.totalorder %s4280_s15, %s4276_s14  ;;  %p301_p6 = scmp.eq.s32.totalorder %s3358_s23, 3 }
  0x16   : > { %s5115_s26 = smov (%p37_p4, %s5113_s26), 0  ;;  %p306_p8 = scmp.ne.s32.totalorder %s4276_s14, %s4272_s13 }
  0x17   : > { %5087 = sst [smem:[#allocation15_spill]] %s5115_s26  ;;  %p4439_p7 = por %p301_p6, %p300_p5 }
  0x18   : > { %s39_s12 = ssub.s32 %s4304_s21, %s5115_s26  ;;  %p307_p9 = scmp.eq.s32.totalorder %s3359_s24, 3 }
  0x19   : > { %s41_s25 = sor.u32 %s40_s28, %s39_s12  ;;  %p288_p10 = scmp.eq.s32.totalorder %s39_s12, 0 }
  0x1a   : > { %p42_p11 = scmp.eq.s32.totalorder %s41_s25, 0  ;;  %p4447_p12 = por %p307_p9, %p306_p8 }
  0x1b   : > { %s4452_s9 = scalar_select %p288_p10, %s4280_s15, %s290_s30  }
  0x1c   : > { %s5089_s10 = scalar_select %p4447_p12, 1, 0 }
  0x1d   : > { %5091 = sst [smem:[#allocation17_spill]] %s4452_s9  ;;  %p3361_p13 = scmp.ge.s32.totalorder %s4308_s22, 4 }
  0x1e   : > { %5090 = sst [smem:[#allocation16_spill]] %s5089_s10 }
  0x1f   : > { %s4455_s23 = scalar_select %p42_p11, %s4288_s17, %s44_s27  }
  0x20   : > { %335 = sbr.rel (%p3361_p13) target bundleno = 185 (0xb9), region = 32 }
  0x21   : > { %5092 = sst [smem:[#allocation18_spill]] %s4455_s23 }
  0x25   : > { %338 = sbr.rel (!%p4430_p3) target bundleno = 111 (0x6f), region = 36  ;;  %s340_s24 = sand.u32 (%p4430_p3), 1, %s4288_s17  }
  0x26   : > { %s3364_s28 = sshll.u32 (%p4430_p3), %s4300_s20, 4  ;;  %s3362_s25 = sshll.u32 (%p4430_p3), %s340_s24, 9 }
  0x27   : > { %s3959_s12 = sshll.u32 (%p4430_p3), %s4304_s21, 8  ;;  %s5093_s0 = sld [smem:[#allocation19_spill]] (%p4430_p3) }
  0x28   : > { %s346_s26 = sadd.s32 (%p4430_p3), %s3959_s12, %s3364_s28  ;;  %s4471_s24 = scalar_lea.vmem (%p4430_p3), [#allocation4], %s3362_s25 }
  0x29   : > { %s3366_s13 = sshll.u32 (%p4430_p3), %s346_s26, 2 }
  0x2d   : > { %s4466_s27 = scalar_lea.vmem %s5093_s0, %s3366_s13 }
  0x2e   : > { %v365_v0 = vld [vmem:[%s4466_s27] sm:$0xff]   ;;  %v369_v1 = vld [vmem:[%s4466_s27 + $0x8] sm:$0xff]   ;;  %v373_v2 = vld [vmem:[%s4466_s27 + $0x10] sm:$0xff]  }
  0x2f   : > { %366 = vst [vmem:[%s4471_s24] sm:$0xff] %v365_v0   ;;  %v377_v3 = vld [vmem:[%s4466_s27 + $0x18] sm:$0xff]   ;;  %v381_v4 = vld [vmem:[%s4466_s27 + $0x20] sm:$0xff]   ;;  %v385_v5 = vld [vmem:[%s4466_s27 + $0x28] sm:$0xff]  }
  0x30   : > { %370 = vst [vmem:[%s4471_s24 + $0x8] sm:$0xff] %v369_v1   ;;  %v389_v6 = vld [vmem:[%s4466_s27 + $0x30] sm:$0xff]   ;;  %v393_v7 = vld [vmem:[%s4466_s27 + $0x38] sm:$0xff]   ;;  %v397_v8 = vld [vmem:[%s4466_s27 + $0x80] sm:$0xff]  }
  0x31   : > { %374 = vst [vmem:[%s4471_s24 + $0x10] sm:$0xff] %v373_v2   ;;  %v401_v9 = vld [vmem:[%s4466_s27 + $0x88] sm:$0xff]   ;;  %v405_v10 = vld [vmem:[%s4466_s27 + $0x90] sm:$0xff]   ;;  %v409_v11 = vld [vmem:[%s4466_s27 + $0x98] sm:$0xff]  }
  0x32   : > { %378 = vst [vmem:[%s4471_s24 + $0x18] sm:$0xff] %v377_v3   ;;  %v413_v12 = vld [vmem:[%s4466_s27 + $0xa0] sm:$0xff]   ;;  %v417_v13 = vld [vmem:[%s4466_s27 + $0xa8] sm:$0xff]   ;;  %v421_v14 = vld [vmem:[%s4466_s27 + $0xb0] sm:$0xff]  }
  0x33   : > { %382 = vst [vmem:[%s4471_s24 + $0x20] sm:$0xff] %v381_v4   ;;  %v425_v15 = vld [vmem:[%s4466_s27 + $0xb8] sm:$0xff]   ;;  %v429_v16 = vld [vmem:[%s4466_s27 + $0x100] sm:$0xff]   ;;  %v433_v17 = vld [vmem:[%s4466_s27 + $0x108] sm:$0xff]  }
  0x34   : > { %386 = vst [vmem:[%s4471_s24 + $0x28] sm:$0xff] %v385_v5   ;;  %v437_v18 = vld [vmem:[%s4466_s27 + $0x110] sm:$0xff]   ;;  %v441_v19 = vld [vmem:[%s4466_s27 + $0x118] sm:$0xff]   ;;  %v445_v20 = vld [vmem:[%s4466_s27 + $0x120] sm:$0xff]  }
  0x35   : > { %390 = vst [vmem:[%s4471_s24 + $0x30] sm:$0xff] %v389_v6   ;;  %v449_v21 = vld [vmem:[%s4466_s27 + $0x128] sm:$0xff]   ;;  %v453_v22 = vld [vmem:[%s4466_s27 + $0x130] sm:$0xff]   ;;  %v457_v23 = vld [vmem:[%s4466_s27 + $0x138] sm:$0xff]  }
  0x36   : > { %394 = vst [vmem:[%s4471_s24 + $0x38] sm:$0xff] %v393_v7   ;;  %v461_v24 = vld [vmem:[%s4466_s27 + $0x180] sm:$0xff]   ;;  %v465_v25 = vld [vmem:[%s4466_s27 + $0x188] sm:$0xff]   ;;  %v469_v26 = vld [vmem:[%s4466_s27 + $0x190] sm:$0xff]  }
  0x37   : > { %398 = vst [vmem:[%s4471_s24 + $0x40] sm:$0xff] %v397_v8   ;;  %v473_v27 = vld [vmem:[%s4466_s27 + $0x198] sm:$0xff]   ;;  %v477_v28 = vld [vmem:[%s4466_s27 + $0x1a0] sm:$0xff]   ;;  %v481_v29 = vld [vmem:[%s4466_s27 + $0x1a8] sm:$0xff]  }
  0x38   : > { %402 = vst [vmem:[%s4471_s24 + $0x48] sm:$0xff] %v401_v9   ;;  %v485_v30 = vld [vmem:[%s4466_s27 + $0x1b0] sm:$0xff]   ;;  %v489_v31 = vld [vmem:[%s4466_s27 + $0x1b8] sm:$0xff]   ;;  %v493_v32 = vld [vmem:[%s4466_s27 + $0x200] sm:$0xff]  }
  0x39   : > { %406 = vst [vmem:[%s4471_s24 + $0x50] sm:$0xff] %v405_v10   ;;  %v497_v33 = vld [vmem:[%s4466_s27 + $0x208] sm:$0xff]   ;;  %v501_v34 = vld [vmem:[%s4466_s27 + $0x210] sm:$0xff]   ;;  %v505_v35 = vld [vmem:[%s4466_s27 + $0x218] sm:$0xff]  }
  0x3a   : > { %410 = vst [vmem:[%s4471_s24 + $0x58] sm:$0xff] %v409_v11   ;;  %v509_v36 = vld [vmem:[%s4466_s27 + $0x220] sm:$0xff]   ;;  %v513_v37 = vld [vmem:[%s4466_s27 + $0x228] sm:$0xff]   ;;  %v517_v38 = vld [vmem:[%s4466_s27 + $0x230] sm:$0xff]  }
  0x3b   : > { %414 = vst [vmem:[%s4471_s24 + $0x60] sm:$0xff] %v413_v12   ;;  %v521_v39 = vld [vmem:[%s4466_s27 + $0x238] sm:$0xff]   ;;  %v525_v40 = vld [vmem:[%s4466_s27 + $0x280] sm:$0xff]   ;;  %v529_v41 = vld [vmem:[%s4466_s27 + $0x288] sm:$0xff]  }
  0x3c   : > { %418 = vst [vmem:[%s4471_s24 + $0x68] sm:$0xff] %v417_v13   ;;  %v533_v42 = vld [vmem:[%s4466_s27 + $0x290] sm:$0xff]   ;;  %v537_v43 = vld [vmem:[%s4466_s27 + $0x298] sm:$0xff]   ;;  %v541_v44 = vld [vmem:[%s4466_s27 + $0x2a0] sm:$0xff]  }
  0x3d   : > { %422 = vst [vmem:[%s4471_s24 + $0x70] sm:$0xff] %v421_v14   ;;  %v545_v45 = vld [vmem:[%s4466_s27 + $0x2a8] sm:$0xff]   ;;  %v549_v46 = vld [vmem:[%s4466_s27 + $0x2b0] sm:$0xff]   ;;  %v553_v47 = vld [vmem:[%s4466_s27 + $0x2b8] sm:$0xff]  }
  0x3e   : > { %426 = vst [vmem:[%s4471_s24 + $0x78] sm:$0xff] %v425_v15   ;;  %v557_v48 = vld [vmem:[%s4466_s27 + $0x300] sm:$0xff]   ;;  %v561_v49 = vld [vmem:[%s4466_s27 + $0x308] sm:$0xff]   ;;  %v565_v50 = vld [vmem:[%s4466_s27 + $0x310] sm:$0xff]  }
  0x3f   : > { %430 = vst [vmem:[%s4471_s24 + $0x80] sm:$0xff] %v429_v16   ;;  %v569_v51 = vld [vmem:[%s4466_s27 + $0x318] sm:$0xff]   ;;  %v573_v52 = vld [vmem:[%s4466_s27 + $0x320] sm:$0xff]   ;;  %v577_v53 = vld [vmem:[%s4466_s27 + $0x328] sm:$0xff]  }
  0x40   : > { %434 = vst [vmem:[%s4471_s24 + $0x88] sm:$0xff] %v433_v17   ;;  %v581_v54 = vld [vmem:[%s4466_s27 + $0x330] sm:$0xff]   ;;  %v585_v55 = vld [vmem:[%s4466_s27 + $0x338] sm:$0xff]   ;;  %v589_v56 = vld [vmem:[%s4466_s27 + $0x380] sm:$0xff]  }
  0x41   : > { %438 = vst [vmem:[%s4471_s24 + $0x90] sm:$0xff] %v437_v18   ;;  %v593_v57 = vld [vmem:[%s4466_s27 + $0x388] sm:$0xff]   ;;  %v597_v58 = vld [vmem:[%s4466_s27 + $0x390] sm:$0xff]   ;;  %v601_v59 = vld [vmem:[%s4466_s27 + $0x398] sm:$0xff]  }
  0x42   : > { %442 = vst [vmem:[%s4471_s24 + $0x98] sm:$0xff] %v441_v19   ;;  %v605_v60 = vld [vmem:[%s4466_s27 + $0x3a0] sm:$0xff]   ;;  %v609_v61 = vld [vmem:[%s4466_s27 + $0x3a8] sm:$0xff]   ;;  %v613_v62 = vld [vmem:[%s4466_s27 + $0x3b0] sm:$0xff]  }
  0x43   : > { %446 = vst [vmem:[%s4471_s24 + $0xa0] sm:$0xff] %v445_v20   ;;  %v617_v63 = vld [vmem:[%s4466_s27 + $0x3b8] sm:$0xff]  }
  0x44   : > { %450 = vst [vmem:[%s4471_s24 + $0xa8] sm:$0xff] %v449_v21  }
  0x45   : > { %454 = vst [vmem:[%s4471_s24 + $0xb0] sm:$0xff] %v453_v22  }
  0x46   : > { %458 = vst [vmem:[%s4471_s24 + $0xb8] sm:$0xff] %v457_v23  }
  0x47   : > { %462 = vst [vmem:[%s4471_s24 + $0xc0] sm:$0xff] %v461_v24  }
  0x48   : > { %466 = vst [vmem:[%s4471_s24 + $0xc8] sm:$0xff] %v465_v25  }
  0x49   : > { %470 = vst [vmem:[%s4471_s24 + $0xd0] sm:$0xff] %v469_v26  }
  0x4a   : > { %474 = vst [vmem:[%s4471_s24 + $0xd8] sm:$0xff] %v473_v27  }
  0x4b   : > { %478 = vst [vmem:[%s4471_s24 + $0xe0] sm:$0xff] %v477_v28  }
  0x4c   : > { %482 = vst [vmem:[%s4471_s24 + $0xe8] sm:$0xff] %v481_v29  }
  0x4d   : > { %486 = vst [vmem:[%s4471_s24 + $0xf0] sm:$0xff] %v485_v30  }
  0x4e   : > { %490 = vst [vmem:[%s4471_s24 + $0xf8] sm:$0xff] %v489_v31  }
  0x4f   : > { %494 = vst [vmem:[%s4471_s24 + $0x100] sm:$0xff] %v493_v32  }
  0x50   : > { %498 = vst [vmem:[%s4471_s24 + $0x108] sm:$0xff] %v497_v33  }
  0x51   : > { %502 = vst [vmem:[%s4471_s24 + $0x110] sm:$0xff] %v501_v34  }
  0x52   : > { %506 = vst [vmem:[%s4471_s24 + $0x118] sm:$0xff] %v505_v35  }
  0x53   : > { %510 = vst [vmem:[%s4471_s24 + $0x120] sm:$0xff] %v509_v36  }
  0x54   : > { %514 = vst [vmem:[%s4471_s24 + $0x128] sm:$0xff] %v513_v37  }
  0x55   : > { %518 = vst [vmem:[%s4471_s24 + $0x130] sm:$0xff] %v517_v38  }
  0x56   : > { %522 = vst [vmem:[%s4471_s24 + $0x138] sm:$0xff] %v521_v39  }
  0x57   : > { %526 = vst [vmem:[%s4471_s24 + $0x140] sm:$0xff] %v525_v40  }
  0x58   : > { %530 = vst [vmem:[%s4471_s24 + $0x148] sm:$0xff] %v529_v41  }
  0x59   : > { %534 = vst [vmem:[%s4471_s24 + $0x150] sm:$0xff] %v533_v42  }
  0x5a   : > { %538 = vst [vmem:[%s4471_s24 + $0x158] sm:$0xff] %v537_v43  }
  0x5b   : > { %542 = vst [vmem:[%s4471_s24 + $0x160] sm:$0xff] %v541_v44  }
  0x5c   : > { %546 = vst [vmem:[%s4471_s24 + $0x168] sm:$0xff] %v545_v45  }
  0x5d   : > { %550 = vst [vmem:[%s4471_s24 + $0x170] sm:$0xff] %v549_v46  }
  0x5e   : > { %554 = vst [vmem:[%s4471_s24 + $0x178] sm:$0xff] %v553_v47  }
  0x5f   : > { %558 = vst [vmem:[%s4471_s24 + $0x180] sm:$0xff] %v557_v48  }
  0x60   : > { %562 = vst [vmem:[%s4471_s24 + $0x188] sm:$0xff] %v561_v49  }
  0x61   : > { %566 = vst [vmem:[%s4471_s24 + $0x190] sm:$0xff] %v565_v50  }
  0x62   : > { %570 = vst [vmem:[%s4471_s24 + $0x198] sm:$0xff] %v569_v51  }
  0x63   : > { %574 = vst [vmem:[%s4471_s24 + $0x1a0] sm:$0xff] %v573_v52  }
  0x64   : > { %578 = vst [vmem:[%s4471_s24 + $0x1a8] sm:$0xff] %v577_v53  }
  0x65   : > { %582 = vst [vmem:[%s4471_s24 + $0x1b0] sm:$0xff] %v581_v54  }
  0x66   : > { %586 = vst [vmem:[%s4471_s24 + $0x1b8] sm:$0xff] %v585_v55  }
  0x67   : > { %590 = vst [vmem:[%s4471_s24 + $0x1c0] sm:$0xff] %v589_v56  }
  0x68   : > { %594 = vst [vmem:[%s4471_s24 + $0x1c8] sm:$0xff] %v593_v57  }
  0x69   : > { %598 = vst [vmem:[%s4471_s24 + $0x1d0] sm:$0xff] %v597_v58  }
  0x6a   : > { %602 = vst [vmem:[%s4471_s24 + $0x1d8] sm:$0xff] %v601_v59  }
  0x6b   : > { %606 = vst [vmem:[%s4471_s24 + $0x1e0] sm:$0xff] %v605_v60  }
  0x6c   : > { %610 = vst [vmem:[%s4471_s24 + $0x1e8] sm:$0xff] %v609_v61  }
  0x6d   : > { %614 = vst [vmem:[%s4471_s24 + $0x1f0] sm:$0xff] %v613_v62  }
  0x6e   : > { %618 = vst [vmem:[%s4471_s24 + $0x1f8] sm:$0xff] %v617_v63  }
  0x6f PF: > { %911 = sbr.rel (!%p4430_p3) target bundleno = 185 (0xb9), region = 81  ;;  %s913_s10 = sand.u32 (%p4430_p3), 1, %s4288_s17  }
  0x70   : > { %s3369_s13 = sshll.u32 (%p4430_p3), %s4300_s20, 4  ;;  %s3367_s26 = sshll.u32 (%p4430_p3), %s913_s10, 9 }
  0x71   : > { %s3960_s28 = sshll.u32 (%p4430_p3), %s4304_s21, 8  ;;  %s5094_s2 = sld [smem:[#allocation20_spill]] (%p4430_p3) }
  0x72   : > { %s919_s25 = sadd.s32 (%p4430_p3), %s3960_s28, %s3369_s13  ;;  %s4611_s29 = scalar_lea.vmem (%p4430_p3), [#allocation5], %s3367_s26 }
  0x73   : > { %s3371_s12 = sshll.u32 (%p4430_p3), %s919_s25, 2 }
  0x77   : > { %s4606_s27 = scalar_lea.vmem %s5094_s2, %s3371_s12 }
  0x78   : > { %v938_v0 = vld [vmem:[%s4606_s27] sm:$0xff]   ;;  %v942_v1 = vld [vmem:[%s4606_s27 + $0x8] sm:$0xff]   ;;  %v946_v2 = vld [vmem:[%s4606_s27 + $0x10] sm:$0xff]  }
  0x79   : > { %939 = vst [vmem:[%s4611_s29] sm:$0xff] %v938_v0   ;;  %v950_v3 = vld [vmem:[%s4606_s27 + $0x18] sm:$0xff]   ;;  %v954_v4 = vld [vmem:[%s4606_s27 + $0x20] sm:$0xff]   ;;  %v958_v5 = vld [vmem:[%s4606_s27 + $0x28] sm:$0xff]  }
  0x7a   : > { %943 = vst [vmem:[%s4611_s29 + $0x8] sm:$0xff] %v942_v1   ;;  %v962_v6 = vld [vmem:[%s4606_s27 + $0x30] sm:$0xff]   ;;  %v966_v7 = vld [vmem:[%s4606_s27 + $0x38] sm:$0xff]   ;;  %v970_v8 = vld [vmem:[%s4606_s27 + $0x80] sm:$0xff]  }
  0x7b   : > { %947 = vst [vmem:[%s4611_s29 + $0x10] sm:$0xff] %v946_v2   ;;  %v974_v9 = vld [vmem:[%s4606_s27 + $0x88] sm:$0xff]   ;;  %v978_v10 = vld [vmem:[%s4606_s27 + $0x90] sm:$0xff]   ;;  %v982_v11 = vld [vmem:[%s4606_s27 + $0x98] sm:$0xff]  }
  0x7c   : > { %951 = vst [vmem:[%s4611_s29 + $0x18] sm:$0xff] %v950_v3   ;;  %v986_v12 = vld [vmem:[%s4606_s27 + $0xa0] sm:$0xff]   ;;  %v990_v13 = vld [vmem:[%s4606_s27 + $0xa8] sm:$0xff]   ;;  %v994_v14 = vld [vmem:[%s4606_s27 + $0xb0] sm:$0xff]  }
  0x7d   : > { %955 = vst [vmem:[%s4611_s29 + $0x20] sm:$0xff] %v954_v4   ;;  %v998_v15 = vld [vmem:[%s4606_s27 + $0xb8] sm:$0xff]   ;;  %v1002_v16 = vld [vmem:[%s4606_s27 + $0x100] sm:$0xff]   ;;  %v1006_v17 = vld [vmem:[%s4606_s27 + $0x108] sm:$0xff]  }
  0x7e   : > { %959 = vst [vmem:[%s4611_s29 + $0x28] sm:$0xff] %v958_v5   ;;  %v1010_v18 = vld [vmem:[%s4606_s27 + $0x110] sm:$0xff]   ;;  %v1014_v19 = vld [vmem:[%s4606_s27 + $0x118] sm:$0xff]   ;;  %v1018_v20 = vld [vmem:[%s4606_s27 + $0x120] sm:$0xff]  }
  0x7f   : > { %963 = vst [vmem:[%s4611_s29 + $0x30] sm:$0xff] %v962_v6   ;;  %v1022_v21 = vld [vmem:[%s4606_s27 + $0x128] sm:$0xff]   ;;  %v1026_v22 = vld [vmem:[%s4606_s27 + $0x130] sm:$0xff]   ;;  %v1030_v23 = vld [vmem:[%s4606_s27 + $0x138] sm:$0xff]  }
  0x80   : > { %967 = vst [vmem:[%s4611_s29 + $0x38] sm:$0xff] %v966_v7   ;;  %v1034_v24 = vld [vmem:[%s4606_s27 + $0x180] sm:$0xff]   ;;  %v1038_v25 = vld [vmem:[%s4606_s27 + $0x188] sm:$0xff]   ;;  %v1042_v26 = vld [vmem:[%s4606_s27 + $0x190] sm:$0xff]  }
  0x81   : > { %971 = vst [vmem:[%s4611_s29 + $0x40] sm:$0xff] %v970_v8   ;;  %v1046_v27 = vld [vmem:[%s4606_s27 + $0x198] sm:$0xff]   ;;  %v1050_v28 = vld [vmem:[%s4606_s27 + $0x1a0] sm:$0xff]   ;;  %v1054_v29 = vld [vmem:[%s4606_s27 + $0x1a8] sm:$0xff]  }
  0x82   : > { %975 = vst [vmem:[%s4611_s29 + $0x48] sm:$0xff] %v974_v9   ;;  %v1058_v30 = vld [vmem:[%s4606_s27 + $0x1b0] sm:$0xff]   ;;  %v1062_v31 = vld [vmem:[%s4606_s27 + $0x1b8] sm:$0xff]   ;;  %v1066_v32 = vld [vmem:[%s4606_s27 + $0x200] sm:$0xff]  }
  0x83   : > { %979 = vst [vmem:[%s4611_s29 + $0x50] sm:$0xff] %v978_v10   ;;  %v1070_v33 = vld [vmem:[%s4606_s27 + $0x208] sm:$0xff]   ;;  %v1074_v34 = vld [vmem:[%s4606_s27 + $0x210] sm:$0xff]   ;;  %v1078_v35 = vld [vmem:[%s4606_s27 + $0x218] sm:$0xff]  }
  0x84   : > { %983 = vst [vmem:[%s4611_s29 + $0x58] sm:$0xff] %v982_v11   ;;  %v1082_v36 = vld [vmem:[%s4606_s27 + $0x220] sm:$0xff]   ;;  %v1086_v37 = vld [vmem:[%s4606_s27 + $0x228] sm:$0xff]   ;;  %v1090_v38 = vld [vmem:[%s4606_s27 + $0x230] sm:$0xff]  }
  0x85   : > { %987 = vst [vmem:[%s4611_s29 + $0x60] sm:$0xff] %v986_v12   ;;  %v1094_v39 = vld [vmem:[%s4606_s27 + $0x238] sm:$0xff]   ;;  %v1098_v40 = vld [vmem:[%s4606_s27 + $0x280] sm:$0xff]   ;;  %v1102_v41 = vld [vmem:[%s4606_s27 + $0x288] sm:$0xff]  }
  0x86   : > { %991 = vst [vmem:[%s4611_s29 + $0x68] sm:$0xff] %v990_v13   ;;  %v1106_v42 = vld [vmem:[%s4606_s27 + $0x290] sm:$0xff]   ;;  %v1110_v43 = vld [vmem:[%s4606_s27 + $0x298] sm:$0xff]   ;;  %v1114_v44 = vld [vmem:[%s4606_s27 + $0x2a0] sm:$0xff]  }
  0x87   : > { %995 = vst [vmem:[%s4611_s29 + $0x70] sm:$0xff] %v994_v14   ;;  %v1118_v45 = vld [vmem:[%s4606_s27 + $0x2a8] sm:$0xff]   ;;  %v1122_v46 = vld [vmem:[%s4606_s27 + $0x2b0] sm:$0xff]   ;;  %v1126_v47 = vld [vmem:[%s4606_s27 + $0x2b8] sm:$0xff]  }
  0x88   : > { %999 = vst [vmem:[%s4611_s29 + $0x78] sm:$0xff] %v998_v15   ;;  %v1130_v48 = vld [vmem:[%s4606_s27 + $0x300] sm:$0xff]   ;;  %v1134_v49 = vld [vmem:[%s4606_s27 + $0x308] sm:$0xff]   ;;  %v1138_v50 = vld [vmem:[%s4606_s27 + $0x310] sm:$0xff]  }
  0x89   : > { %1003 = vst [vmem:[%s4611_s29 + $0x80] sm:$0xff] %v1002_v16   ;;  %v1142_v51 = vld [vmem:[%s4606_s27 + $0x318] sm:$0xff]   ;;  %v1146_v52 = vld [vmem:[%s4606_s27 + $0x320] sm:$0xff]   ;;  %v1150_v53 = vld [vmem:[%s4606_s27 + $0x328] sm:$0xff]  }
  0x8a   : > { %1007 = vst [vmem:[%s4611_s29 + $0x88] sm:$0xff] %v1006_v17   ;;  %v1154_v54 = vld [vmem:[%s4606_s27 + $0x330] sm:$0xff]   ;;  %v1158_v55 = vld [vmem:[%s4606_s27 + $0x338] sm:$0xff]   ;;  %v1162_v56 = vld [vmem:[%s4606_s27 + $0x380] sm:$0xff]  }
  0x8b   : > { %1011 = vst [vmem:[%s4611_s29 + $0x90] sm:$0xff] %v1010_v18   ;;  %v1166_v57 = vld [vmem:[%s4606_s27 + $0x388] sm:$0xff]   ;;  %v1170_v58 = vld [vmem:[%s4606_s27 + $0x390] sm:$0xff]   ;;  %v1174_v59 = vld [vmem:[%s4606_s27 + $0x398] sm:$0xff]  }
  0x8c   : > { %1015 = vst [vmem:[%s4611_s29 + $0x98] sm:$0xff] %v1014_v19   ;;  %v1178_v60 = vld [vmem:[%s4606_s27 + $0x3a0] sm:$0xff]   ;;  %v1182_v61 = vld [vmem:[%s4606_s27 + $0x3a8] sm:$0xff]   ;;  %v1186_v62 = vld [vmem:[%s4606_s27 + $0x3b0] sm:$0xff]  }
  0x8d   : > { %1019 = vst [vmem:[%s4611_s29 + $0xa0] sm:$0xff] %v1018_v20   ;;  %v1190_v63 = vld [vmem:[%s4606_s27 + $0x3b8] sm:$0xff]  }
  0x8e   : > { %1023 = vst [vmem:[%s4611_s29 + $0xa8] sm:$0xff] %v1022_v21  }
  0x8f   : > { %1027 = vst [vmem:[%s4611_s29 + $0xb0] sm:$0xff] %v1026_v22  }
  0x90   : > { %1031 = vst [vmem:[%s4611_s29 + $0xb8] sm:$0xff] %v1030_v23  }
  0x91   : > { %1035 = vst [vmem:[%s4611_s29 + $0xc0] sm:$0xff] %v1034_v24  }
  0x92   : > { %1039 = vst [vmem:[%s4611_s29 + $0xc8] sm:$0xff] %v1038_v25  }
  0x93   : > { %1043 = vst [vmem:[%s4611_s29 + $0xd0] sm:$0xff] %v1042_v26  }
  0x94   : > { %1047 = vst [vmem:[%s4611_s29 + $0xd8] sm:$0xff] %v1046_v27  }
  0x95   : > { %1051 = vst [vmem:[%s4611_s29 + $0xe0] sm:$0xff] %v1050_v28  }
  0x96   : > { %1055 = vst [vmem:[%s4611_s29 + $0xe8] sm:$0xff] %v1054_v29  }
  0x97   : > { %1059 = vst [vmem:[%s4611_s29 + $0xf0] sm:$0xff] %v1058_v30  }
  0x98   : > { %1063 = vst [vmem:[%s4611_s29 + $0xf8] sm:$0xff] %v1062_v31  }
  0x99   : > { %1067 = vst [vmem:[%s4611_s29 + $0x100] sm:$0xff] %v1066_v32  }
  0x9a   : > { %1071 = vst [vmem:[%s4611_s29 + $0x108] sm:$0xff] %v1070_v33  }
  0x9b   : > { %1075 = vst [vmem:[%s4611_s29 + $0x110] sm:$0xff] %v1074_v34  }
  0x9c   : > { %1079 = vst [vmem:[%s4611_s29 + $0x118] sm:$0xff] %v1078_v35  }
  0x9d   : > { %1083 = vst [vmem:[%s4611_s29 + $0x120] sm:$0xff] %v1082_v36  }
  0x9e   : > { %1087 = vst [vmem:[%s4611_s29 + $0x128] sm:$0xff] %v1086_v37  }
  0x9f   : > { %1091 = vst [vmem:[%s4611_s29 + $0x130] sm:$0xff] %v1090_v38  }
  0xa0   : > { %1095 = vst [vmem:[%s4611_s29 + $0x138] sm:$0xff] %v1094_v39  }
  0xa1   : > { %1099 = vst [vmem:[%s4611_s29 + $0x140] sm:$0xff] %v1098_v40  }
  0xa2   : > { %1103 = vst [vmem:[%s4611_s29 + $0x148] sm:$0xff] %v1102_v41  }
  0xa3   : > { %1107 = vst [vmem:[%s4611_s29 + $0x150] sm:$0xff] %v1106_v42  }
  0xa4   : > { %1111 = vst [vmem:[%s4611_s29 + $0x158] sm:$0xff] %v1110_v43  }
  0xa5   : > { %1115 = vst [vmem:[%s4611_s29 + $0x160] sm:$0xff] %v1114_v44  }
  0xa6   : > { %1119 = vst [vmem:[%s4611_s29 + $0x168] sm:$0xff] %v1118_v45  }
  0xa7   : > { %1123 = vst [vmem:[%s4611_s29 + $0x170] sm:$0xff] %v1122_v46  }
  0xa8   : > { %1127 = vst [vmem:[%s4611_s29 + $0x178] sm:$0xff] %v1126_v47  }
  0xa9   : > { %1131 = vst [vmem:[%s4611_s29 + $0x180] sm:$0xff] %v1130_v48  }
  0xaa   : > { %1135 = vst [vmem:[%s4611_s29 + $0x188] sm:$0xff] %v1134_v49  }
  0xab   : > { %1139 = vst [vmem:[%s4611_s29 + $0x190] sm:$0xff] %v1138_v50  }
  0xac   : > { %1143 = vst [vmem:[%s4611_s29 + $0x198] sm:$0xff] %v1142_v51  }
  0xad   : > { %1147 = vst [vmem:[%s4611_s29 + $0x1a0] sm:$0xff] %v1146_v52  }
  0xae   : > { %1151 = vst [vmem:[%s4611_s29 + $0x1a8] sm:$0xff] %v1150_v53  }
  0xaf   : > { %1155 = vst [vmem:[%s4611_s29 + $0x1b0] sm:$0xff] %v1154_v54  }
  0xb0   : > { %1159 = vst [vmem:[%s4611_s29 + $0x1b8] sm:$0xff] %v1158_v55  }
  0xb1   : > { %1163 = vst [vmem:[%s4611_s29 + $0x1c0] sm:$0xff] %v1162_v56  }
  0xb2   : > { %1167 = vst [vmem:[%s4611_s29 + $0x1c8] sm:$0xff] %v1166_v57  }
  0xb3   : > { %1171 = vst [vmem:[%s4611_s29 + $0x1d0] sm:$0xff] %v1170_v58  }
  0xb4   : > { %1175 = vst [vmem:[%s4611_s29 + $0x1d8] sm:$0xff] %v1174_v59  }
  0xb5   : > { %1179 = vst [vmem:[%s4611_s29 + $0x1e0] sm:$0xff] %v1178_v60  }
  0xb6   : > { %1183 = vst [vmem:[%s4611_s29 + $0x1e8] sm:$0xff] %v1182_v61  }
  0xb7   : > { %1187 = vst [vmem:[%s4611_s29 + $0x1f0] sm:$0xff] %v1186_v62  }
  0xb8   : > { %1191 = vst [vmem:[%s4611_s29 + $0x1f8] sm:$0xff] %v1190_v63  }
  0xb9 PF: > { %p3372_p0 = scmp.ge.s32.totalorder %s4308_s22, 1  ;;  %p1497_p1 = scmp.lt.s32.totalorder %s4308_s22, 5 }
  0xbb   : > { %p1498_p2 = pnand %p3372_p0, %p1497_p1 }
  0xbc   : > { %s1504_s0 = sand.u32 (!%p1498_p2), 1, %s4284_s16   ;;  %s5073_s24 = sand.u32 (!%p1498_p2), 1, %s4276_s14  }
  0xbd   : > { %1501 = sbr.rel (%p1498_p2) target bundleno = 780 (0x30c), region = 134  ;;  %s3373_s10 = sshll.u32 (!%p1498_p2), %s1504_s0, 9 }
  0xbe   : > { %s4744_s13 = sshll.u32 (!%p1498_p2), %s5073_s24, 3  ;;  %p1578_p3 = scmp.lt.s32.totalorder (!%p1498_p2), %s4296_s19, 1 }
  0xbf   : > { %p1580_p4 = scmp.lt.s32.totalorder (!%p1498_p2), %s4292_s18, 1  ;;  %p3382_p5 = scmp.ne.s32.totalorder (!%p1498_p2), %s4292_s18, 0 }
  0xc2   : > { %s1579_s26 = scalar_select %p1578_p3, %s4296_s19, 1 }
  0xc3   : > { %s1581_s28 = scalar_select %p1580_p4, %s4292_s18, 1 }
  0xc4   : > { %s3376_s25 = sshll.u32 %s1579_s26, 1  ;;  %s3380_s12 = sshll.u32 %s1579_s26, 3 }
  0xc5   : > { %s1583_s30 = sadd.s32 %s3376_s25, %s1581_s28  ;;  %s4753_s2 = scalar_lea.vmem %s5059_s4, %s3380_s12 }
  0xc6   : > { %s3377_s21 = sshll.u32 %s1583_s30, 3  ;;  %s4758_s0 = scalar_lea.vmem %s5060_s5, %s3380_s12 }
  0xc7   : > { %s4763_s17 = scalar_lea.vmem %s5056_s1, %s3377_s21  ;;  %s4768_s26 = scalar_lea.vmem %s5058_s3, %s3377_s21 }
  0xc8   : > { %s4770_s28 = scalar_lea.vmem [#allocation4], %s3373_s10  ;;  %s4772_s25 = scalar_lea.vmem [#allocation5], %s3373_s10 }
  0xc9   : > { %s1575_s30 = scalar_lea.vmem [#allocation6], %s4744_s13  ;;  %1608 = sbr.rel (%p3382_p5) target bundleno = 209 (0xd1), region = 146 }
  0xce   : > { %vm1609_vm0 = vcmask 523264   ;;  %v4310_v0 = vmov 0.0  }
  0xcf   : > { %1610 = vst.msk [vmem:[#allocation2] sm:$0xff] %vm1609_vm0, %v4310_v0 }
  0xd0   : > { %1611 = vst.msk [vmem:[#allocation3] sm:$0xff] %vm1609_vm0, %v4310_v0 }
  0xd1 PF: > { %v3968_v1 = vld [vmem:[%s4770_s28 + $0x38] sm:$0xff]  ;;  %v3967_v5 = vld [vmem:[%s4770_s28 + $0x30] sm:$0xff]  ;;  %v3966_v9 = vld [vmem:[%s4770_s28 + $0x28] sm:$0xff]  ;;  %vm1621_vm1 = vcmask 1041409   ;;  %vm1616_vm2 = vcmask 1040384   ;;  %vm1629_vm3 = vcmask 1043459  }
  0xd2   : > { %v3976_v2 = vld [vmem:[%s4770_s28 + $0x78] sm:$0xff]  ;;  %1845 = vmatpush.bf16.msra.mxu0 %v3968_v1  ;;  %v3975_v6 = vld [vmem:[%s4770_s28 + $0x70] sm:$0xff]  ;;  %v3974_v10 = vld [vmem:[%s4770_s28 + $0x68] sm:$0xff]  ;;  %vm1625_vm4 = vcmask 1042434   ;;  %vm2962_vm5 = vcmask 1044484   ;;  %vm2965_vm6 = vcmask 1045509  }
  0xd3   : > { %v3984_v3 = vld [vmem:[%s4770_s28 + $0xb8] sm:$0xff]  ;;  %1909 = vmatpush.bf16.msra.mxu1 %v3976_v2  ;;  %v3983_v7 = vld [vmem:[%s4770_s28 + $0xb0] sm:$0xff]  ;;  %v3982_v11 = vld [vmem:[%s4770_s28 + $0xa8] sm:$0xff]  ;;  %vm2968_vm7 = vcmask 1046534   ;;  %vm2971_vm8 = vcmask 1047559   ;;  %vm2975_vm9 = vcmask 523264  }
  0xd4   : > { %v3992_v4 = vld [vmem:[%s4770_s28 + $0xf8] sm:$0xff]  ;;  %1973 = vmatpush.bf16.msra.mxu2 %v3984_v3  ;;  %v3991_v8 = vld [vmem:[%s4770_s28 + $0xf0] sm:$0xff]  ;;  %v3990_v12 = vld [vmem:[%s4770_s28 + $0xe8] sm:$0xff]  ;;  %p3903_p6 = scmp.ne.s32.totalorder %s4292_s18, 1 }
  0xd5   : > { %2037 = vmatpush.bf16.msra.mxu3 %v3992_v4  ;;  %v3965_v13 = vld [vmem:[%s4770_s28 + $0x20] sm:$0xff]  ;;  %v3964_v17 = vld [vmem:[%s4770_s28 + $0x18] sm:$0xff]  ;;  %v1612_v21 = vld [vmem:[%s4763_s17] sm:$0xff]  ;;  %s5095_s24 = sld [smem:[#allocation21_spill]] (!%p3903_p6) }
  0xd6   : > { %1846 = vmatpush.bf16.msra.mxu0 %v3967_v5  ;;  %v3973_v14 = vld [vmem:[%s4770_s28 + $0x60] sm:$0xff]  ;;  %v3972_v18 = vld [vmem:[%s4770_s28 + $0x58] sm:$0xff]  ;;  %v4797_v22 = vpack.c.bf16 %v1612_v21, %v1612_v21  ;;  %v3963_v23 = vld [vmem:[%s4770_s28 + $0x10] sm:$0xff] }
  0xd7   : > { %1910 = vmatpush.bf16.msra.mxu1 %v3975_v6  ;;  %v3981_v15 = vld [vmem:[%s4770_s28 + $0xa0] sm:$0xff]  ;;  %v3980_v19 = vld [vmem:[%s4770_s28 + $0x98] sm:$0xff]  ;;  %v3971_v24 = vld [vmem:[%s4770_s28 + $0x50] sm:$0xff] }
  0xd8   : > { %1974 = vmatpush.bf16.msra.mxu2 %v3983_v7  ;;  %v3989_v16 = vld [vmem:[%s4770_s28 + $0xe0] sm:$0xff]  ;;  %v3988_v20 = vld [vmem:[%s4770_s28 + $0xd8] sm:$0xff]  ;;  %v3979_v25 = vld [vmem:[%s4770_s28 + $0x90] sm:$0xff]  ;;  %v4804_v27 = vrot.slane %v4797_v22, 3 }
  0xd9   : > { %2038 = vmatpush.bf16.msra.mxu3 %v3991_v8  ;;  %v3987_v26 = vld [vmem:[%s4770_s28 + $0xd0] sm:$0xff]  ;;  %v3962_v30 = vld [vmem:[%s4770_s28 + $0x8] sm:$0xff]  ;;  %v3961_v37 = vld [vmem:[%s4770_s28] sm:$0xff] }
  0xda   : > { %1847 = vmatpush.bf16.msra.mxu0 %v3966_v9  ;;  %v1622_v28 = vsel %vm1621_vm1, %v4797_v22, %v4804_v27  ;;  %v1619_v29 = vsel %vm1616_vm2, %v4797_v22, %v4804_v27  ;;  %v3970_v31 = vld [vmem:[%s4770_s28 + $0x48] sm:$0xff]  ;;  %v3969_v38 = vld [vmem:[%s4770_s28 + $0x40] sm:$0xff]  ;;  %v4000_v45 = vld [vmem:[%s4770_s28 + $0x138] sm:$0xff]  ;;  %v1630_v5 = vsel %vm1629_vm3, %v4797_v22, %v4804_v27  ;;  %v1626_v6 = vsel %vm1625_vm4, %v4797_v22, %v4804_v27 }
  0xdb   : > { %1911 = vmatpush.bf16.msra.mxu1 %v3974_v10  ;;  %v1624_v32 = vrot.slane %v1622_v28, 1  ;;  %v3978_v33 = vld [vmem:[%s4770_s28 + $0x88] sm:$0xff]  ;;  %v1634_v35 = vunpack.i.h.s16 %v1619_v29  ;;  %v3977_v41 = vld [vmem:[%s4770_s28 + $0x80] sm:$0xff]  ;;  %v3383_v43 = vpack.i.b16 %v1619_v29, %v1619_v29  ;;  %v4008_v46 = vld [vmem:[%s4770_s28 + $0x178] sm:$0xff]  ;;  %v1632_v9 = vrot.slane %v1630_v5, 3 }
  0xdc   : > { %1975 = vmatpush.bf16.msra.mxu2 %v3982_v11  ;;  %v3986_v34 = vld [vmem:[%s4770_s28 + $0xc8] sm:$0xff]  ;;  %v3985_v42 = vld [vmem:[%s4770_s28 + $0xc0] sm:$0xff]  ;;  %v4016_v47 = vld [vmem:[%s4770_s28 + $0x1b8] sm:$0xff] }
  0xdd   : > { %2039 = vmatpush.bf16.msra.mxu3 %v3990_v12  ;;  %v1636_v36 = vunpack.i.h.s16 %v1624_v32  ;;  %v3448_v39 = vpack.i.b16 %v1624_v32, %v1624_v32  ;;  %v1858_v44 = vpack.i.b16 %v1634_v35, %v1634_v35  ;;  %v4024_v48 = vld [vmem:[%s4770_s28 + $0x1f8] sm:$0xff]  ;;  %v1795_v51 = vperm.slane %v3383_v43, 0  ;;  %v3999_v53 = vld [vmem:[%s4770_s28 + $0x130] sm:$0xff]  ;;  %v3998_v57 = vld [vmem:[%s4770_s28 + $0x128] sm:$0xff] }
  0xde   : > { %1848 = vmatpush.bf16.msra.mxu0 %v3965_v13  ;;  %v4007_v54 = vld [vmem:[%s4770_s28 + $0x170] sm:$0xff]  ;;  %v4006_v58 = vld [vmem:[%s4770_s28 + $0x168] sm:$0xff]  ;;  %v3997_v61 = vld [vmem:[%s4770_s28 + $0x120] sm:$0xff]  ;;  %v1628_v12 = vrot.slane %v1626_v6, 2  ;;  %v3578_v21 = vpack.i.b16 %v1632_v9, %v1632_v9 }
  0xdf   : > { %1912 = vmatpush.bf16.msra.mxu1 %v3973_v14  ;;  %v1986_v40 = vpack.i.b16 %v1636_v36, %v1636_v36  ;;  %v1923_v49 = vperm.slane %v3448_v39, 0  ;;  %v1859_v52 = vperm.slane %v1858_v44, 0  ;;  %v4015_v55 = vld [vmem:[%s4770_s28 + $0x1b0] sm:$0xff]  ;;  %v4014_v59 = vld [vmem:[%s4770_s28 + $0x1a8] sm:$0xff]  ;;  %v4005_v62 = vld [vmem:[%s4770_s28 + $0x160] sm:$0xff] }
  0xe0   : > { %1976 = vmatpush.bf16.msra.mxu2 %v3981_v15  ;;  %v4023_v56 = vld [vmem:[%s4770_s28 + $0x1f0] sm:$0xff]  ;;  %v4022_v60 = vld [vmem:[%s4770_s28 + $0x1e8] sm:$0xff]  ;;  %v4013_v63 = vld [vmem:[%s4770_s28 + $0x1a0] sm:$0xff]  ;;  %v1640_v15 = vunpack.i.h.s16 %v1632_v9 }
  0xe1   : > { %2040 = vmatpush.bf16.msra.mxu3 %v3989_v16  ;;  %v1987_v50 = vperm.slane %v1986_v40, 0  ;;  %v4021_v0 = vld [vmem:[%s4770_s28 + $0x1e0] sm:$0xff]  ;;  %v3996_v1 = vld [vmem:[%s4770_s28 + $0x118] sm:$0xff]  ;;  %v3995_v7 = vld [vmem:[%s4770_s28 + $0x110] sm:$0xff] }
  0xe2   : > { %1849 = vmatpush.bf16.msra.mxu0 %v3964_v17  ;;  %v4004_v2 = vld [vmem:[%s4770_s28 + $0x158] sm:$0xff]  ;;  %v4003_v8 = vld [vmem:[%s4770_s28 + $0x150] sm:$0xff]  ;;  %v3994_v13 = vld [vmem:[%s4770_s28 + $0x108] sm:$0xff]  ;;  %v2242_v22 = vpack.i.b16 %v1640_v15, %v1640_v15 }
  0xe3   : > { %1913 = vmatpush.bf16.msra.mxu1 %v3972_v18  ;;  %v4012_v3 = vld [vmem:[%s4770_s28 + $0x198] sm:$0xff]  ;;  %v4011_v10 = vld [vmem:[%s4770_s28 + $0x190] sm:$0xff]  ;;  %v4002_v14 = vld [vmem:[%s4770_s28 + $0x148] sm:$0xff]  ;;  %v1638_v18 = vunpack.i.h.s16 %v1628_v12 }
  0xe4   : > { %1977 = vmatpush.bf16.msra.mxu2 %v3980_v19  ;;  %v4020_v4 = vld [vmem:[%s4770_s28 + $0x1d8] sm:$0xff]  ;;  %v4019_v11 = vld [vmem:[%s4770_s28 + $0x1d0] sm:$0xff]  ;;  %v4010_v16 = vld [vmem:[%s4770_s28 + $0x188] sm:$0xff]  ;;  %v2243_v32 = vperm.slane %v2242_v22, 0 }
  0xe5   : > { %2041 = vmatpush.bf16.msra.mxu3 %v3988_v20  ;;  %v4018_v17 = vld [vmem:[%s4770_s28 + $0x1c8] sm:$0xff]  ;;  %v3993_v19 = vld [vmem:[%s4770_s28 + $0x100] sm:$0xff]  ;;  %v4032_v27 = vld [vmem:[%s4772_s25 + $0x38] sm:$0xff] }
  0xe6   : > { %1850 = vmatpush.bf16.msra.mxu0 %v3963_v23  ;;  %v4001_v20 = vld [vmem:[%s4770_s28 + $0x140] sm:$0xff]  ;;  %v4040_v28 = vld [vmem:[%s4772_s25 + $0x78] sm:$0xff]  ;;  %v4031_v35 = vld [vmem:[%s4772_s25 + $0x30] sm:$0xff] }
  0xe7   : > { %1914 = vmatpush.bf16.msra.mxu1 %v3971_v24  ;;  %v4009_v23 = vld [vmem:[%s4770_s28 + $0x180] sm:$0xff]  ;;  %v4048_v29 = vld [vmem:[%s4772_s25 + $0xb8] sm:$0xff]  ;;  %v4039_v36 = vld [vmem:[%s4772_s25 + $0x70] sm:$0xff] }
  0xe8   : > { %1978 = vmatpush.bf16.msra.mxu2 %v3979_v25  ;;  %v4017_v24 = vld [vmem:[%s4770_s28 + $0x1c0] sm:$0xff]  ;;  %v3513_v25 = vpack.i.b16 %v1628_v12, %v1628_v12  ;;  %v1641_v39 = vld [vmem:[%s4768_s26] sm:$0xff]  ;;  %v4030_v40 = vld [vmem:[%s4772_s25 + $0x28] sm:$0xff] }
  0xe9   : > { %2042 = vmatpush.bf16.msra.mxu3 %v3987_v26  ;;  %v2114_v26 = vpack.i.b16 %v1638_v18, %v1638_v18  ;;  %v4046_v43 = vld [vmem:[%s4772_s25 + $0xa8] sm:$0xff]  ;;  %v4072_v12 = vld [vmem:[%s4772_s25 + $0x178] sm:$0xff]  ;;  %v4087_v22 = vld [vmem:[%s4772_s25 + $0x1f0] sm:$0xff] }
  0xea   : > { %1851 = vmatpush.bf16.msra.mxu0 %v3962_v30  ;;  %v4056_v30 = vld [vmem:[%s4772_s25 + $0xf8] sm:$0xff]  ;;  %v4054_v44 = vld [vmem:[%s4772_s25 + $0xe8] sm:$0xff] }
  0xeb   : > { %1915 = vmatpush.bf16.msra.mxu1 %v3970_v31  ;;  %v2179_v31 = vperm.slane %v3578_v21, 0  ;;  %v4079_v21 = vld [vmem:[%s4772_s25 + $0x1b0] sm:$0xff] }
  0xec   : > { %1979 = vmatpush.bf16.msra.mxu2 %v3978_v33  ;;  %v2051_v33 = vperm.slane %v3513_v25, 0  ;;  %v4078_v25 = vld [vmem:[%s4772_s25 + $0x1a8] sm:$0xff] }
  0xed   : > { %2043 = vmatpush.bf16.msra.mxu3 %v3986_v34  ;;  %v2115_v34 = vperm.slane %v2114_v26, 0  ;;  %v4086_v26 = vld [vmem:[%s4772_s25 + $0x1e8] sm:$0xff] }
  0xee   : > { %1852 = vmatpush.bf16.msra.mxu0 %v3961_v37  ;;  %v4047_v37 = vld [vmem:[%s4772_s25 + $0xb0] sm:$0xff] }
  0xef   : > { %1916 = vmatpush.bf16.msra.mxu1 %v3969_v38  ;;  %v4055_v38 = vld [vmem:[%s4772_s25 + $0xf0] sm:$0xff] }
  0xf0   : > { %1980 = vmatpush.bf16.msra.mxu2 %v3977_v41  ;;  %v4038_v41 = vld [vmem:[%s4772_s25 + $0x68] sm:$0xff] }
  0xf1   : > { %2044 = vmatpush.bf16.msra.mxu3 %v3985_v42  ;;  %1853 = vmatmul.bf16.vlgmr.msra.gmra.mxu0 %v1795_v51  ;;  %v4869_v42 = vpack.c.bf16 %v1641_v39, %v1641_v39  ;;  %v4036_v51 = vld [vmem:[%s4772_s25 + $0x58] sm:$0xff]  ;;  %v4067_v39 = vld [vmem:[%s4772_s25 + $0x150] sm:$0xff] }
  0xf2   : > { %2101 = vmatpush.bf16.msrb.mxu0 %v4000_v45  ;;  %1917 = vmatmul.bf16.vlgmr.msra.gmra.mxu1 %v1859_v52  ;;  %v4029_v45 = vld [vmem:[%s4772_s25 + $0x20] sm:$0xff]  ;;  %v4044_v52 = vld [vmem:[%s4772_s25 + $0x98] sm:$0xff] }
  0xf3   : > { %2165 = vmatpush.bf16.msrb.mxu1 %v4008_v46  ;;  %1981 = vmatmul.bf16.vlgmr.msra.gmra.mxu2 %v1923_v49  ;;  %v4037_v46 = vld [vmem:[%s4772_s25 + $0x60] sm:$0xff] }
  0xf4   : > { %2229 = vmatpush.bf16.msrb.mxu2 %v4016_v47  ;;  %2045 = vmatmul.bf16.vlgmr.msra.gmra.mxu3 %v1987_v50  ;;  %v4876_v47 = vrot.slane %v4869_v42, 3  ;;  %v4053_v49 = vld [vmem:[%s4772_s25 + $0xe0] sm:$0xff]  ;;  %v4028_v50 = vld [vmem:[%s4772_s25 + $0x18] sm:$0xff] }
  0xf5   : > { %2293 = vmatpush.bf16.msrb.mxu3 %v4024_v48  ;;  %v4045_v48 = vld [vmem:[%s4772_s25 + $0xa0] sm:$0xff] }
  0xf6   : > { %2102 = vmatpush.bf16.msrb.mxu0 %v3999_v53  ;;  %v4052_v53 = vld [vmem:[%s4772_s25 + $0xd8] sm:$0xff] }
  0xf7   : > { %2166 = vmatpush.bf16.msrb.mxu1 %v4007_v54  ;;  %v1649_v54 = vsel %vm1621_vm1, %v4869_v42, %v4876_v47 }
  0xf8   : > { %2230 = vmatpush.bf16.msrb.mxu2 %v4015_v55  ;;  %v4027_v55 = vld [vmem:[%s4772_s25 + $0x10] sm:$0xff] }
  0xf9   : > { %2294 = vmatpush.bf16.msrb.mxu3 %v4023_v56  ;;  %v4035_v56 = vld [vmem:[%s4772_s25 + $0x50] sm:$0xff] }
  0xfa   : > { %2103 = vmatpush.bf16.msrb.mxu0 %v3998_v57  ;;  %v1651_v57 = vrot.slane %v1649_v54, 1 }
  0xfb   : > { %2167 = vmatpush.bf16.msrb.mxu1 %v4006_v58  ;;  %v4043_v58 = vld [vmem:[%s4772_s25 + $0x90] sm:$0xff] }
  0xfc   : > { %2231 = vmatpush.bf16.msrb.mxu2 %v4014_v59  ;;  %v4051_v59 = vld [vmem:[%s4772_s25 + $0xd0] sm:$0xff]  ;;  %v3708_v5 = vpack.i.b16 %v1651_v57, %v1651_v57 }
  0xfd   : > { %2295 = vmatpush.bf16.msrb.mxu3 %v4022_v60  ;;  %v1647_v60 = vsel %vm1616_vm2, %v4869_v42, %v4876_v47 }
  0xfe   : > { %2104 = vmatpush.bf16.msrb.mxu0 %v3997_v61  ;;  %v4026_v61 = vld [vmem:[%s4772_s25 + $0x8] sm:$0xff]  ;;  %v3643_v9 = vpack.i.b16 %v1647_v60, %v1647_v60  ;;  %v2563_v15 = vperm.slane %v3708_v5, 0 }
  0xff   : > { %2168 = vmatpush.bf16.msrb.mxu1 %v4005_v62  ;;  %v4034_v62 = vld [vmem:[%s4772_s25 + $0x48] sm:$0xff] }
 0x100   : > { %2232 = vmatpush.bf16.msrb.mxu2 %v4013_v63  ;;  %v1661_v63 = vunpack.i.h.s16 %v1651_v57 }
 0x101   : > { %2296 = vmatpush.bf16.msrb.mxu3 %v4021_v0  ;;  %v4042_v0 = vld [vmem:[%s4772_s25 + $0x88] sm:$0xff] }
 0x102   : > { %2105 = vmatpush.bf16.msrb.mxu0 %v3996_v1  ;;  %v4050_v1 = vld [vmem:[%s4772_s25 + $0xc8] sm:$0xff]  ;;  %v2626_v6 = vpack.i.b16 %v1661_v63, %v1661_v63 }
 0x103   : > { %2169 = vmatpush.bf16.msrb.mxu1 %v4004_v2  ;;  %v1659_v2 = vunpack.i.h.s16 %v1647_v60 }
 0x104   : > { %2233 = vmatpush.bf16.msrb.mxu2 %v4012_v3  ;;  %v4025_v3 = vld [vmem:[%s4772_s25] sm:$0xff] }
 0x105   : > { %2297 = vmatpush.bf16.msrb.mxu3 %v4020_v4  ;;  %v4033_v4 = vld [vmem:[%s4772_s25 + $0x40] sm:$0xff] }
 0x106   : > { %2106 = vmatpush.bf16.msrb.mxu0 %v3995_v7  ;;  %v4041_v7 = vld [vmem:[%s4772_s25 + $0x80] sm:$0xff] }
 0x107   : > { %2170 = vmatpush.bf16.msrb.mxu1 %v4003_v8  ;;  %v4049_v8 = vld [vmem:[%s4772_s25 + $0xc0] sm:$0xff] }
 0x108   : > { %2234 = vmatpush.bf16.msrb.mxu2 %v4011_v10  ;;  %v2498_v10 = vpack.i.b16 %v1659_v2, %v1659_v2 }
 0x109   : > { %2298 = vmatpush.bf16.msrb.mxu3 %v4019_v11  ;;  %v4064_v11 = vld [vmem:[%s4772_s25 + $0x138] sm:$0xff] }
 0x10a   : > { %2107 = vmatpush.bf16.msrb.mxu0 %v3994_v13  ;;  %v4080_v13 = vld [vmem:[%s4772_s25 + $0x1b8] sm:$0xff]  ;;  %v2499_v18 = vperm.slane %v2498_v10, 0 }
 0x10b   : > { %2171 = vmatpush.bf16.msrb.mxu1 %v4002_v14  ;;  %v4088_v14 = vld [vmem:[%s4772_s25 + $0x1f8] sm:$0xff] }
 0x10c   : > { %2235 = vmatpush.bf16.msrb.mxu2 %v4010_v16  ;;  %v2627_v16 = vperm.slane %v2626_v6, 0 }
 0x10d   : > { %2299 = vmatpush.bf16.msrb.mxu3 %v4018_v17  ;;  %v2435_v17 = vperm.slane %v3643_v9, 0 }
 0x10e   : > { %2108 = vmatpush.bf16.msrb.mxu0 %v3993_v19  ;;  %v4063_v19 = vld [vmem:[%s4772_s25 + $0x130] sm:$0xff] }
 0x10f   : > { %2172 = vmatpush.bf16.msrb.mxu1 %v4001_v20  ;;  %v4071_v20 = vld [vmem:[%s4772_s25 + $0x170] sm:$0xff] }
 0x110   : > { %2236 = vmatpush.bf16.msrb.mxu2 %v4009_v23  ;;  %v4062_v23 = vld [vmem:[%s4772_s25 + $0x128] sm:$0xff] }
 0x111   : > { %2300 = vmatpush.bf16.msrb.mxu3 %v4017_v24  ;;  %2109 = vmatmul.bf16.vlgmr.msrb.gmra.mxu0 %v2051_v33  ;;  %v4070_v24 = vld [vmem:[%s4772_s25 + $0x168] sm:$0xff]  ;;  %v1652_v33 = vsel %vm1625_vm4, %v4869_v42, %v4876_v47 }
 0x112   : > { %2485 = vmatpush.bf16.msra.mxu0 %v4032_v27  ;;  %2173 = vmatmul.bf16.vlgmr.msrb.gmra.mxu1 %v2115_v34  ;;  %v4061_v27 = vld [vmem:[%s4772_s25 + $0x120] sm:$0xff]  ;;  %v4076_v34 = vld [vmem:[%s4772_s25 + $0x198] sm:$0xff] }
 0x113   : > { %2549 = vmatpush.bf16.msra.mxu1 %v4040_v28  ;;  %2237 = vmatmul.bf16.vlgmr.msrb.gmra.mxu2 %v2179_v31  ;;  %v4069_v28 = vld [vmem:[%s4772_s25 + $0x160] sm:$0xff]  ;;  %v4060_v31 = vld [vmem:[%s4772_s25 + $0x118] sm:$0xff] }
 0x114   : > { %2613 = vmatpush.bf16.msra.mxu2 %v4048_v29  ;;  %2301 = vmatmul.bf16.vlgmr.msrb.gmra.mxu3 %v2243_v32  ;;  %v4077_v29 = vld [vmem:[%s4772_s25 + $0x1a0] sm:$0xff]  ;;  %v4068_v32 = vld [vmem:[%s4772_s25 + $0x158] sm:$0xff] }
 0x115   : > { %2677 = vmatpush.bf16.msra.mxu3 %v4056_v30  ;;  %v4085_v30 = vld [vmem:[%s4772_s25 + $0x1e0] sm:$0xff] }
 0x116   : > { %2486 = vmatpush.bf16.msra.mxu0 %v4031_v35  ;;  %v4084_v35 = vld [vmem:[%s4772_s25 + $0x1d8] sm:$0xff] }
 0x117   : > { %2550 = vmatpush.bf16.msra.mxu1 %v4039_v36  ;;  %v1655_v36 = vsel %vm1629_vm3, %v4869_v42, %v4876_v47  ;;  %v4074_v47 = vld [vmem:[%s4772_s25 + $0x188] sm:$0xff] }
 0x118   : > { %2614 = vmatpush.bf16.msra.mxu2 %v4047_v37  ;;  %v1654_v37 = vrot.slane %v1652_v33, 2 }
 0x119   : > { %2678 = vmatpush.bf16.msra.mxu3 %v4055_v38  ;;  %v4059_v38 = vld [vmem:[%s4772_s25 + $0x110] sm:$0xff] }
 0x11a   : > { %2487 = vmatpush.bf16.msra.mxu0 %v4030_v40  ;;  %v1657_v40 = vrot.slane %v1655_v36, 3 }
 0x11b   : > { %2551 = vmatpush.bf16.msra.mxu1 %v4038_v41  ;;  %v4075_v41 = vld [vmem:[%s4772_s25 + $0x190] sm:$0xff] }
 0x11c   : > { %2615 = vmatpush.bf16.msra.mxu2 %v4046_v43  ;;  %v4083_v43 = vld [vmem:[%s4772_s25 + $0x1d0] sm:$0xff]  ;;  %v1665_v42 = vunpack.i.h.s16 %v1657_v40 }
 0x11d   : > { %2679 = vmatpush.bf16.msra.mxu3 %v4054_v44  ;;  %v1663_v44 = vunpack.i.h.s16 %v1654_v37 }
 0x11e   : > { %2488 = vmatpush.bf16.msra.mxu0 %v4029_v45  ;;  %v4058_v45 = vld [vmem:[%s4772_s25 + $0x108] sm:$0xff]  ;;  %v2882_v54 = vpack.i.b16 %v1665_v42, %v1665_v42 }
 0x11f   : > { %2552 = vmatpush.bf16.msra.mxu1 %v4037_v46  ;;  %v4066_v46 = vld [vmem:[%s4772_s25 + $0x148] sm:$0xff] }
 0x120   : > { %2616 = vmatpush.bf16.msra.mxu2 %v4045_v48  ;;  %v4082_v48 = vld [vmem:[%s4772_s25 + $0x1c8] sm:$0xff]  ;;  %v2883_v60 = vperm.slane %v2882_v54, 0 }
 0x121   : > { %2680 = vmatpush.bf16.msra.mxu3 %v4053_v49  ;;  %v3773_v49 = vpack.i.b16 %v1654_v37, %v1654_v37 }
 0x122   : > { %2489 = vmatpush.bf16.msra.mxu0 %v4028_v50  ;;  %v2754_v50 = vpack.i.b16 %v1663_v44, %v1663_v44 }
 0x123   : > { %2553 = vmatpush.bf16.msra.mxu1 %v4036_v51  ;;  %v4057_v51 = vld [vmem:[%s4772_s25 + $0x100] sm:$0xff]  ;;  %v2691_v57 = vperm.slane %v3773_v49, 0 }
 0x124   : > { %2617 = vmatpush.bf16.msra.mxu2 %v4044_v52  ;;  %v4065_v52 = vld [vmem:[%s4772_s25 + $0x140] sm:$0xff] }
 0x125   : > { %2681 = vmatpush.bf16.msra.mxu3 %v4052_v53  ;;  %v3838_v53 = vpack.i.b16 %v1657_v40, %v1657_v40 }
 0x126   : > { %2490 = vmatpush.bf16.msra.mxu0 %v4027_v55  ;;  %v4073_v55 = vld [vmem:[%s4772_s25 + $0x180] sm:$0xff] }
 0x127   : > { %2554 = vmatpush.bf16.msra.mxu1 %v4035_v56  ;;  %v4081_v56 = vld [vmem:[%s4772_s25 + $0x1c0] sm:$0xff] }
 0x128   : > { %2618 = vmatpush.bf16.msra.mxu2 %v4043_v58  ;;  %v2755_v58 = vperm.slane %v2754_v50, 0 }
 0x129   : > { %2682 = vmatpush.bf16.msra.mxu3 %v4051_v59  ;;  %v2819_v59 = vperm.slane %v3838_v53, 0 }
 0x12a   : > { %2491 = vmatpush.bf16.msra.mxu0 %v4026_v61 }
 0x12b   : > { %2555 = vmatpush.bf16.msra.mxu1 %v4034_v62 }
 0x12c   : > { %2619 = vmatpush.bf16.msra.mxu2 %v4042_v0 }
 0x12d   : > { %2683 = vmatpush.bf16.msra.mxu3 %v4050_v1 }
 0x12e   : > { %2492 = vmatpush.bf16.msra.mxu0 %v4025_v3 }
 0x12f   : > { %2556 = vmatpush.bf16.msra.mxu1 %v4033_v4 }
 0x130   : > { %2620 = vmatpush.bf16.msra.mxu2 %v4041_v7 }
 0x131   : > { %2684 = vmatpush.bf16.msra.mxu3 %v4049_v8  ;;  %2493 = vmatmul.bf16.vlgmr.msra.gmra.mxu0 %v2435_v17 }
 0x132   : > { %2741 = vmatpush.bf16.msrb.mxu0 %v4064_v11  ;;  %2557 = vmatmul.bf16.vlgmr.msra.gmra.mxu1 %v2499_v18 }
 0x133   : > { %2805 = vmatpush.bf16.msrb.mxu1 %v4072_v12  ;;  %2621 = vmatmul.bf16.vlgmr.msra.gmra.mxu2 %v2563_v15 }
 0x134   : > { %2869 = vmatpush.bf16.msrb.mxu2 %v4080_v13  ;;  %2685 = vmatmul.bf16.vlgmr.msra.gmra.mxu3 %v2627_v16 }
 0x135   : > { %2933 = vmatpush.bf16.msrb.mxu3 %v4088_v14 }
 0x136   : > { %2742 = vmatpush.bf16.msrb.mxu0 %v4063_v19 }
 0x137   : > { %2806 = vmatpush.bf16.msrb.mxu1 %v4071_v20 }
 0x138   : > { %2870 = vmatpush.bf16.msrb.mxu2 %v4079_v21  ;;  %v2946_v21 = vld [vmem:[#allocation2] sm:$0xff] }
 0x139   : > { %2934 = vmatpush.bf16.msrb.mxu3 %v4087_v22 }
 0x13a   : > { %2743 = vmatpush.bf16.msrb.mxu0 %v4062_v23 }
 0x13b   : > { %2807 = vmatpush.bf16.msrb.mxu1 %v4070_v24 }
 0x13c   : > { %2871 = vmatpush.bf16.msrb.mxu2 %v4078_v25 }
 0x13d   : > { %2935 = vmatpush.bf16.msrb.mxu3 %v4086_v26 }
 0x13e   : > { %2744 = vmatpush.bf16.msrb.mxu0 %v4061_v27 }
 0x13f   : > { %2808 = vmatpush.bf16.msrb.mxu1 %v4069_v28 }
 0x140   : > { %2872 = vmatpush.bf16.msrb.mxu2 %v4077_v29 }
 0x141   : > { %2936 = vmatpush.bf16.msrb.mxu3 %v4085_v30 }
 0x142   : > { %2745 = vmatpush.bf16.msrb.mxu0 %v4060_v31 }
 0x143   : > { %2809 = vmatpush.bf16.msrb.mxu1 %v4068_v32 }
 0x144   : > { %2873 = vmatpush.bf16.msrb.mxu2 %v4076_v34 }
 0x145   : > { %2937 = vmatpush.bf16.msrb.mxu3 %v4084_v35 }
 0x146   : > { %2746 = vmatpush.bf16.msrb.mxu0 %v4059_v38 }
 0x147   : > { %2810 = vmatpush.bf16.msrb.mxu1 %v4067_v39 }
 0x148   : > { %2874 = vmatpush.bf16.msrb.mxu2 %v4075_v41 }
 0x149   : > { %2938 = vmatpush.bf16.msrb.mxu3 %v4083_v43 }
 0x14a   : > { %2747 = vmatpush.bf16.msrb.mxu0 %v4058_v45 }
 0x14b   : > { %2811 = vmatpush.bf16.msrb.mxu1 %v4066_v46 }
 0x14c   : > { %2875 = vmatpush.bf16.msrb.mxu2 %v4074_v47 }
 0x14d   : > { %2939 = vmatpush.bf16.msrb.mxu3 %v4082_v48 }
 0x14e   : > { %2748 = vmatpush.bf16.msrb.mxu0 %v4057_v51 }
 0x14f   : > { %2812 = vmatpush.bf16.msrb.mxu1 %v4065_v52 }
 0x150   : > { %2876 = vmatpush.bf16.msrb.mxu2 %v4073_v55  ;;  %v2977_v55 = vld [vmem:[#allocation3] sm:$0xff] }
 0x151   : > { %2940 = vmatpush.bf16.msrb.mxu3 %v4081_v56  ;;  %2749 = vmatmul.bf16.vlgmr.msrb.gmra.mxu0 %v2691_v57 }
 0x152   : > { %2813 = vmatmul.bf16.vlgmr.msrb.gmra.mxu1 %v2755_v58 }
 0x153   : > { %2877 = vmatmul.bf16.vlgmr.msrb.gmra.mxu2 %v2819_v59 }
 0x154   : > { %2941 = vmatmul.bf16.vlgmr.msrb.gmra.mxu3 %v2883_v60 }
 0x16e   : > { %v1854_v61 = vpop.f32.mrf.mxu0 }
 0x16f   : > { %v1918_v62 = vpop.f32.mrf.mxu1 }
 0x170   : > { %v2955_v5 = vrot.slane %v1918_v62, 7 }
 0x172   : > { %v2956_v7 = vsel %vm1621_vm1, %v2955_v5, %v1854_v61 }
 0x176   : > { %v1982_v63 = vpop.f32.mrf.mxu2  ;;  %v1856_v1 = vpop.f32.mrf.mxu0 }
 0x177   : > { %v2046_v0 = vpop.f32.mrf.mxu3  ;;  %v1920_v2 = vpop.f32.mrf.mxu1  ;;  %v2957_v6 = vrot.slane %v1982_v63, 6 }
 0x178   : > { %v2959_v8 = vrot.slane %v2046_v0, 5 }
 0x179   : > { %v2958_v9 = vsel %vm1625_vm4, %v2957_v6, %v2956_v7 }
 0x17a   : > { %v2960_v10 = vsel %vm1629_vm3, %v2959_v8, %v2958_v9 }
 0x17e   : > { %v1984_v3 = vpop.f32.mrf.mxu2 }
 0x17f   : > { %v2048_v4 = vpop.f32.mrf.mxu3 }
 0x18e   : > { %v2110_v11 = vpop.f32.mrf.mxu0 }
 0x18f   : > { %v2174_v12 = vpop.f32.mrf.mxu1  ;;  %v2961_v13 = vrot.slane %v2110_v11, 4 }
 0x190   : > { %v2964_v14 = vrot.slane %v2174_v12, 3 }
 0x191   : > { %v2963_v15 = vsel %vm2962_vm5, %v2961_v13, %v2960_v10 }
 0x192   : > { %v2966_v16 = vsel %vm2965_vm6, %v2964_v14, %v2963_v15 }
 0x196   : > { %v2238_v17 = vpop.f32.mrf.mxu2  ;;  %v2112_v23 = vpop.f32.mrf.mxu0 }
 0x197   : > { %v2302_v18 = vpop.f32.mrf.mxu3  ;;  %v2967_v19 = vrot.slane %v2238_v17, 2  ;;  %v2176_v24 = vpop.f32.mrf.mxu1 }
 0x198   : > { %v2970_v20 = vrot.slane %v2302_v18, 1 }
 0x199   : > { %v2969_v22 = vsel %vm2968_vm7, %v2967_v19, %v2966_v16 }
 0x19a   : > { %v2972_v25 = vsel %vm2971_vm8, %v2970_v20, %v2969_v22 }
 0x19b   : > { %v2974_v26 = vadd.f32 %v2972_v25, %v2946_v21 }
 0x19d   : > { %2976 = vst.msk [vmem:[#allocation2] sm:$0xff] %vm2975_vm9, %v2974_v26 }
 0x19e   : > { %v2240_v27 = vpop.f32.mrf.mxu2 }
 0x19f   : > { %v2304_v28 = vpop.f32.mrf.mxu3 }
 0x1ae   : > { %v2494_v29 = vpop.f32.mrf.mxu0 }
 0x1af   : > { %v2558_v30 = vpop.f32.mrf.mxu1 }
 0x1b0   : > { %v2986_v37 = vrot.slane %v2558_v30, 7 }
 0x1b2   : > { %v2987_v39 = vsel %vm1621_vm1, %v2986_v37, %v2494_v29 }
 0x1b6   : > { %v2622_v31 = vpop.f32.mrf.mxu2  ;;  %v2496_v33 = vpop.f32.mrf.mxu0 }
 0x1b7   : > { %v2686_v32 = vpop.f32.mrf.mxu3  ;;  %v2560_v34 = vpop.f32.mrf.mxu1  ;;  %v2988_v38 = vrot.slane %v2622_v31, 6 }
 0x1b8   : > { %v2990_v43 = vrot.slane %v2686_v32, 5 }
 0x1b9   : > { %v2989_v44 = vsel %vm1625_vm4, %v2988_v38, %v2987_v39 }
 0x1ba   : > { %v2991_v46 = vsel %vm1629_vm3, %v2990_v43, %v2989_v44 }
 0x1be   : > { %v2624_v35 = vpop.f32.mrf.mxu2 }
 0x1bf   : > { %v2688_v36 = vpop.f32.mrf.mxu3 }
 0x1ce   : > { %v2750_v40 = vpop.f32.mrf.mxu0 }
 0x1cf   : > { %v2814_v41 = vpop.f32.mrf.mxu1  ;;  %v2992_v45 = vrot.slane %v2750_v40, 4 }
 0x1d0   : > { %v2994_v42 = vrot.slane %v2814_v41, 3 }
 0x1d1   : > { %v2993_v47 = vsel %vm2962_vm5, %v2992_v45, %v2991_v46 }
 0x1d2   : > { %v2995_v54 = vsel %vm2965_vm6, %v2994_v42, %v2993_v47 }
 0x1d6   : > { %v2878_v48 = vpop.f32.mrf.mxu2  ;;  %v2752_v52 = vpop.f32.mrf.mxu0 }
 0x1d7   : > { %v2942_v49 = vpop.f32.mrf.mxu3  ;;  %v2996_v50 = vrot.slane %v2878_v48, 2  ;;  %v2816_v53 = vpop.f32.mrf.mxu1 }
 0x1d8   : > { %v2998_v51 = vrot.slane %v2942_v49, 1 }
 0x1d9   : > { %v2997_v56 = vsel %vm2968_vm7, %v2996_v50, %v2995_v54 }
 0x1da   : > { %v2999_v57 = vsel %vm2971_vm8, %v2998_v51, %v2997_v56 }
 0x1db   : > { %v3001_v58 = vadd.f32 %v2999_v57, %v2977_v55  ;;  %3006 = sbr.rel (%p3903_p6) target bundleno = 760 (0x2f8), region = 150 }
 0x1dd   : > { %3002 = vst.msk [vmem:[#allocation3] sm:$0xff] %vm2975_vm9, %v3001_v58 }
 0x1de   : > { %v2880_v59 = vpop.f32.mrf.mxu2 }
 0x1df   : > { %v2944_v60 = vpop.f32.mrf.mxu3 }
 0x1e0   : > { %v3008_v61 = vld [vmem:[%s4753_s2] sm:$0xff]  ;;  %v4092_v62 = vld [vmem:[%s5061_s6 + $0x18] sm:$0xff]  ;;  %v4311_v63 = vmov 0   ;;  %v4091_v1 = vld [vmem:[%s5061_s6 + $0x10] sm:$0xff] }
 0x1e1   : > { %4190 = vset.pattern.permute.xlu0 %v4311_v63  ;;  %3118 = vmatpush.bf16.msra.mxu1 %v4092_v62  ;;  %v3016_v0 = vld [vmem:[%s4758_s0] sm:$0xff]  ;;  %v4096_v2 = vld [vmem:[%s5062_s7 + $0x18] sm:$0xff]  ;;  %v4090_v3 = vld [vmem:[%s5061_s6 + $0x8] sm:$0xff] }
 0x1e2   : > { %3011 = vperm.xlu0 %4190, %v3008_v61   ;;  %3078 = vmatpush.bf16.msra.mxu0 %v4096_v2  ;;  %v4095_v4 = vld [vmem:[%s5062_s7 + $0x10] sm:$0xff]  ;;  %v4089_v5 = vld [vmem:[%s5061_s6] sm:$0xff]  ;;  %v4100_v6 = vld [vmem:[%s5063_s8 + $0x18] sm:$0xff] }
 0x1e3   : > { %3166 = vmatpush.bf16.msra.mxu2 %v4100_v6  ;;  %v4094_v7 = vld [vmem:[%s5062_s7 + $0x8] sm:$0xff]  ;;  %v4099_v8 = vld [vmem:[%s5063_s8 + $0x10] sm:$0xff]  ;;  %v4093_v9 = vld [vmem:[%s5062_s7] sm:$0xff] }
 0x1e4   : > { %v4098_v10 = vld [vmem:[%s5063_s8 + $0x8] sm:$0xff]  ;;  %v4097_v11 = vld [vmem:[%s5063_s8] sm:$0xff] }
 0x1e5   : > { %3119 = vmatpush.bf16.msra.mxu1 %v4091_v1  ;;  %v3007_v12 = vld [vmem:[#allocation2] sm:$0xff]  ;;  %v3015_v15 = vld [vmem:[#allocation3] sm:$0xff] }
 0x1e6   : > { %3079 = vmatpush.bf16.msra.mxu0 %v4095_v4  ;;  %v4191_v31 = vld [vmem:[%s5095_s24] ss:$0 sm:$0xff] }
 0x1e7   : > { %3167 = vmatpush.bf16.msra.mxu2 %v4099_v8 }
 0x1e9   : > { %3120 = vmatpush.bf16.msra.mxu1 %v4090_v3 }
 0x1ea   : > { %3019 = vperm.xlu0 %4190, %v3016_v0   ;;  %3080 = vmatpush.bf16.msra.mxu0 %v4094_v7 }
 0x1eb   : > { %3168 = vmatpush.bf16.msra.mxu2 %v4098_v10 }
 0x1ed   : > { %3121 = vmatpush.bf16.msra.mxu1 %v4089_v5 }
 0x1ee   : > { %3081 = vmatpush.bf16.msra.mxu0 %v4093_v9 }
 0x1ef   : > { %3169 = vmatpush.bf16.msra.mxu2 %v4097_v11 }
 0x254   : > { %v3012_v13 = vpop.permute.xlu0 %3011 }
 0x255   : > { %v3014_v14 = vmul.f32 %v3012_v13, %v3007_v12 }
 0x257   : > { %4192 = vtanh.f32 %v3014_v14 }
 0x25c   : > { %v3020_v16 = vpop.permute.xlu0 %3019 }
 0x25d   : > { %v4193_v17 = vpop.eup %4192  ;;  %v3022_v18 = vmul.f32 %v3020_v16, %v3015_v15 }
 0x25e   : > { %v3026_v19 = vpack.c.bf16 %v4193_v17, %v4193_v17 }
 0x25f   : > { %v3023_v20 = vsub.f32 %v3014_v14, %v3022_v18  ;;  %4194 = vtanh.f32 %v3022_v18 }
 0x260   : > { %3937 = vmatmul.msk.bf16.vlgmr.msra.gmra.mxu1 %vm2975_vm9, %v3026_v19 }
 0x261   : > { %v3024_v21 = vand.u32 2147483647, %v3023_v20 }
 0x263   : > { %4196 = vtanh.f32 %v3024_v21 }
 0x265   : > { %v4195_v22 = vpop.eup %4194 }
 0x266   : > { %v3028_v23 = vpack.c.bf16 %v4195_v22, %v4195_v22 }
 0x268   : > { %3920 = vmatmul.msk.bf16.vlgmr.msra.gmra.mxu0 %vm2975_vm9, %v3028_v23 }
 0x269   : > { %v4197_v24 = vpop.eup %4196 }
 0x26a   : > { %v3030_v25 = vpack.c.bf16 %v4197_v24, %v4197_v24 }
 0x26c   : > { %3954 = vmatmul.msk.bf16.vlgmr.msra.gmra.mxu2 %vm2975_vm9, %v3030_v25 }
 0x2dd   : > { %v3123_v26 = vpop.f32.mrf.mxu1 }
 0x2e5   : > { %v3083_v27 = vpop.f32.mrf.mxu0  ;;  %v3125_v28 = vpop.f32.mrf.mxu1 }
 0x2e6   : > { %v3124_v30 = vadd.f32 %v3123_v26, %v3083_v27 }
 0x2ed   : > { %v3085_v29 = vpop.f32.mrf.mxu0 }
 0x2ef   : > { %v3171_v32 = vpop.f32.mrf.mxu2 }
 0x2f0   : > { %v3175_v33 = vadd.f32 %v3171_v32, %v3124_v30 }
 0x2f2   : > { %v3180_v34 = vadd.f32 %v4191_v31, %v3175_v33 }
 0x2f4   : > { %3181 = vst [vmem:[%s1575_s30] sm:$0xff] %v3180_v34 }
 0x2f7   : > { %v3173_v35 = vpop.f32.mrf.mxu2 }
 0x2f8 PF: > { %s3956_s10 = sshll.u32 %s4296_s19, 3  ;;  %s5096_s29 = sld [smem:[#allocation22_spill]] }
 0x2f9   : > { %s3195_s0 = sshll.u32 %s1575_s30, 4  ;;  %s5097_s28 = sand.u32 1, %s4276_s14   ;;  %s3196_s0 = int_to_ptr.vmem [resolvable:$true] %s3195_s0 }
 0x2fa   : > { %s3183_s25 = scalar_lea.sflag [#allocation7], %s5097_s28 }
 0x2fe   : > { %s3193_s16 = scalar_lea.hbm %s5096_s29, %s3956_s10  ;;  %s4218_s20 = scalar_lea.hbm %s5096_s29, 16 }
 0x2ff   : > { %s3197_s26 = sshll.u32 %s3193_s16, 4  ;;  %s3198_s26 = int_to_ptr.hbm [resolvable:$true] %s3197_s26 }
 0x300   : > { %s4212_s9 = sshra.s32 %s3198_s26, 4  ;;  %s4213_s9 = int_to_ptr.hbm [resolvable:$true] %s4212_s9 }
 0x301   : > { %s4214_s15 = scalar_lea.hbm %s4213_s9, 8  ;;  %p4219_p11 = scmp.lt.s32.totalorder %s4213_s9, %s5096_s29 }
 0x302   : > { %p4215_p8 = scmp.ne.s32.totalorder %s4213_s9, %s4214_s15  ;;  %p4220_p13 = scmp.lt.s32.totalorder %s4218_s20, %s4214_s15 }
 0x304   : > { %p4216_p9 = pnand %p4215_p8, %p4439_p7  ;;  %p4221_p0 = por %p4220_p13, %p4219_p11 }
 0x306   : > { %p4217_p10 = pneg %p4216_p9 }
 0x308   : > { %p4222_p1 = pnand %p4221_p0, %p4217_p10 }
 0x30a   : > { %4225 = shalt.err (!%p4222_p1)
}
 0x30b   : > { %4101 = dma.vmem_to_hbm [thread:$0]  (%p4439_p7), %s3196_s0, 128, %s3198_s26, %s3183_s25  }
 0x30c PF: > { %s5098_s13 = sld [smem:[#allocation9_spill]]  ;;  %p4107_p2 = scmp.ge.s32.totalorder %s4308_s22, 2 }
 0x30e   : > { %p4104_p3 = pnand %p4107_p2, %p4447_p12 }
 0x310   : > { %p4105_p4 = pneg %p4104_p3 }
 0x312   : > { %s3209_s2 = sand.u32 1, %s5098_s13  }
 0x313   : > { %s3210_s23 = scalar_lea.sflag [#allocation7], %s3209_s2 }
 0x314   : > { %4267 = dma.done.wait (%p4105_p4), %s3210_s23, 128  }
 0x315   : > { %4269 = vsyncadd (%p4105_p4), %s3210_s23, 4294967168  ;;  %s23_s22 = sadd.s32 1, %s4308_s22   ;;  %s5100_s24 = sld [smem:[#allocation10_spill]] }
 0x316   : > { %p20_p5 = scmp.ge.s32.totalorder %s23_s22, 6   ;;  %s5101_s15 = sld [smem:[#allocation17_spill]] }
 0x317   : > { %s5102_s16 = sld [smem:[#allocation11_spill]]  ;;  %s5108_s13 = smov %s4276_s14 }
 0x318   : > { %s5103_s17 = sld [smem:[#allocation18_spill]]  ;;  %22 = sbr.rel (!%p20_p5) target bundleno = 11 (0xb), region = 210 }
 0x319   : > { %s5104_s18 = sld [smem:[#allocation12_spill]] }
 0x31a   : > { %s5105_s19 = sld [smem:[#allocation13_spill]] }
 0x31b   : > { %s5106_s20 = sld [smem:[#allocation14_spill]]  ;;  %s5109_s14 = smov %s5100_s24 }
 0x31c   : > { %s5107_s21 = sld [smem:[#allocation15_spill]] }
 0x31d   :  { %3216 = vsyncpa [#allocation7], 1 }
 0x31e   :  { %3218 = vsyncpa [#allocation7 + $0x1], 1 }

</bundles_post_ra>
